<compile_context>
chip_gen: v6e
topology: v6e:2x2x1
jax: 0.10.0
libtpu: 0.0.40
codegen_flags: <defaults>
</compile_context>

<pallas_src>
import math

import jax
import jax.numpy as jnp
from jax.experimental import pallas as pl
from jax.experimental.pallas import tpu as pltpu

# Shapes implied by the module (L = 600 is forced by x.view(B, 30, 20)).
KS = 11          # deform-offset Conv1d kernel size (parameters are numerically dead)
L = 600          # sequence length
C = 30           # channels after view
FC_IN = 20       # Linear(20, 150)
H = 150
H_MLP = 128
BN_EPS = 1e-5    # BatchNorm1d default eps
EPS = 1e-8       # module's epsilon
PROW_W = 160     # lane width of packed row-parameter slab (>= max(H, H_MLP + 1))


def _independent_cnn_kernel(x_ref, prow_ref, pcol_ref, w1_ref, nz_ref, ibx_ref, kl_ref):
    """Fused forward.

    x_ref:    (B, 600)      VMEM  raw input (channel dim squeezed)
    prow_ref: (4, 160)      VMEM  rows: [sum_k Wfc, bfc, b1, w2 | b2 at lane 128]
    pcol_ref: (30, 2)       VMEM  columns: [gamma, beta] of BatchNorm1d(30)
    w1_ref:   (150, 128)    VMEM  Linear(150, 128) weight, (in, out) layout
    nz_ref:   (B, 30, 150)  VMEM  uniform[0,1) noise (stands in for torch.rand_like)
    ibx_ref:  (B, 30, 150)  VMEM  ib_x output
    kl_ref:   (1, 1)        VMEM  KL_Loss
    """
    B = x_ref.shape[0]

    # ---- packed parameters (static slices of the two tiny slabs)
    wsum = prow_ref[0:1, 0:H]                 # (1, H)   sum_k Wfc[k, :]
    bfc = prow_ref[1:2, 0:H]                  # (1, H)
    b1 = prow_ref[2:3, 0:H_MLP]               # (1, 128)
    w2 = prow_ref[3:4, 0:H_MLP]               # (1, 128)
    b2 = prow_ref[3:4, H_MLP:H_MLP + 1]       # (1, 1)
    gamma = pcol_ref[:, 0:1]                  # (C, 1)
    beta = pcol_ref[:, 1:2]                   # (C, 1)

    # ---- offset-conv + grid_sample + tap-mean, collapsed: every tap samples
    #      0.5*(x[:,299] + x[:,300]).  Masked lane reduce, no unaligned lane slices.
    lane = jax.lax.broadcasted_iota(jnp.int32, x_ref.shape, dimension=1)
    sel = jnp.logical_or(lane == (L // 2 - 1), lane == (L // 2))
    c = 0.5 * jnp.sum(jnp.where(sel, x_ref[...], 0.0), axis=1, keepdims=True)   # (B, 1)

    # ---- fc: Linear(20, 150) on a constant-K input is a rank-1 FMA (VPU, no MXU).
    #      The resulting row is identical for all 30 channels of a batch element.
    yrows = [c[b:b + 1, :] * wsum + bfc for b in range(B)]                       # B x (1, H)

    # ---- BatchNorm1d(30), training mode (batch stats, biased variance, eps=1e-5).
    #      y is channel-independent, so every channel's stats over (batch, 150) equal the
    #      scalar stats of the shared rows; computed exactly on (1, H) rows.
    ssum = jnp.sum(yrows[0], axis=1, keepdims=True)
    for b in range(1, B):
        ssum = ssum + jnp.sum(yrows[b], axis=1, keepdims=True)
    mu = ssum * (1.0 / float(B * H))                                             # (1, 1)
    drows = [yr - mu for yr in yrows]                                            # B x (1, H)
    ssq = jnp.sum(drows[0] * drows[0], axis=1, keepdims=True)
    for b in range(1, B):
        ssq = ssq + jnp.sum(drows[b] * drows[b], axis=1, keepdims=True)
    var = ssq * (1.0 / float(B * H))                                             # biased
    a_col = gamma * jax.lax.rsqrt(var + BN_EPS)                                  # (C, 1)
    # TODO(synk): training-mode BatchNorm also updates running_mean/running_var as a side
    # effect; emit mu/var as extra outputs if the surrounding training loop needs them.

    kl_acc = jnp.zeros((1, 1), jnp.float32)
    inv_h = 1.0 / float(H)
    for b in range(B):
        # ReLU(BN(fc(x))) for batch element b: (1,H) row x (C,1) affine -> (C,H) page.
        ybn = jnp.maximum(drows[b] * a_col + beta, 0.0)                          # (C, H)

        # per-(batch, channel) statistics over the 150 features
        cm = jnp.sum(ybn, axis=1, keepdims=True) * inv_h                         # (C, 1)
        dev = ybn - cm
        rq = jnp.sum(dev * dev, axis=1, keepdims=True)                           # (C, 1)
        cs = jnp.sqrt(rq * (1.0 / float(H - 1)))                                 # unbiased std

        # channel importance: Linear(150,128) -> ReLU -> Linear(128,1) -> sigmoid.
        # (the 1-column Linear stays on the VPU: multiply + lane reduce against w2;
        #  cast ybn/w1 to bf16 here only if a future large-B variant is MXU-bound)
        h = jnp.maximum(
            jnp.dot(ybn, w1_ref[...], preferred_element_type=jnp.float32) + b1, 0.0)
        ci = jax.nn.sigmoid(jnp.sum(h * w2, axis=1, keepdims=True) + b2)         # (C, 1)
        om = 1.0 - ci
        ib_std = om * cs                                                          # (C, 1)

        # fused information-bottleneck output store (no ib_mean slab kept live)
        ibx_ref[b] = ybn * ci + om * cm + nz_ref[b] * ib_std                      # (C, H)

        # KL in closed form on (C,1) columns:
        #   sum_l (ib_mean - cm)^2 = ci^2 * sum_l dev^2 = ci^2 * rq
        inv_cs2 = 1.0 / ((cs + EPS) * (cs + EPS))
        kl_col = 0.5 * (ib_std * ib_std * inv_cs2
                        + (cs * cs) / ((ib_std + EPS) * (ib_std + EPS)) - 1.0)    # (C, 1)
        extra = (ci * ci) * rq * inv_cs2                                          # (C, 1)
        kl_acc = kl_acc + jnp.sum(kl_col * float(H) + extra, axis=0, keepdims=True)

    kl_ref[...] = kl_acc * (1.0 / float(B * C * H))


def init_params(key):
    """Deterministic synthetic parameters matching the PyTorch module's shapes."""
    ks = jax.random.split(key, 8)

    def u(k, shape, fan_in):
        bound = 1.0 / math.sqrt(fan_in)
        return jax.random.uniform(k, shape, jnp.float32, minval=-bound, maxval=bound)

    return dict(
        # Conv1d(1, 11, k=11, pad=5): kept for shape completeness, numerically dead
        # (degenerate grid_sample -- see header).
        w_conv=u(ks[0], (KS, 1, KS), 1 * KS),
        b_conv=u(ks[1], (KS,), 1 * KS),
        w_fc=u(ks[2], (FC_IN, H), FC_IN),      # Linear(20, 150), stored (in, out)
        b_fc=u(ks[3], (H,), FC_IN),
        gamma=jnp.ones((C,), jnp.float32),     # BatchNorm1d(30) affine init
        beta=jnp.zeros((C,), jnp.float32),
        w1=u(ks[4], (H, H_MLP), H),            # Linear(150, 128), stored (in, out)
        b1=u(ks[5], (H_MLP,), H),
        w2=u(ks[6], (H_MLP,), H_MLP),          # Linear(128, 1) weight as a 128-lane row
        b2=u(ks[7], (), H_MLP),
    )


def pack_params(p):
    """One-time packing of the small parameters into two tiny VMEM slabs.

    Done once outside the jitted step so no per-call XLA concat/pad ops are added; it cuts
    the kernel's input DMA count from 10 to 5.
    """
    prow = jnp.zeros((4, PROW_W), jnp.float32)
    prow = prow.at[0, :H].set(jnp.sum(p["w_fc"], axis=0))   # rank-1 fc collapse: sum_k Wfc
    prow = prow.at[1, :H].set(p["b_fc"])
    prow = prow.at[2, :H_MLP].set(p["b1"])
    prow = prow.at[3, :H_MLP].set(p["w2"])
    prow = prow.at[3, H_MLP].set(p["b2"])
    pcol = jnp.stack([p["gamma"], p["beta"]], axis=1)        # (C, 2)
    return dict(prow=prow, pcol=pcol, w1=p["w1"])


@jax.jit
def independent_cnn_forward(x, packed, noise):
    """x: (B, 1, 600) float32 (NCW, as in PyTorch); noise: (B, 30, 150) uniform[0,1)."""
    B = x.shape[0]
    assert x.shape[1] == 1 and x.shape[2] == L
    assert noise.shape == (B, C, H)
    x2d = x.reshape(B, L)                      # contiguous squeeze -> free

    vmem = pl.BlockSpec(memory_space=pltpu.MemorySpace.VMEM)
    ibx, kl = pl.pallas_call(
        _independent_cnn_kernel,
        out_shape=(jax.ShapeDtypeStruct((B, C, H), jnp.float32),
                   jax.ShapeDtypeStruct((1, 1), jnp.float32)),
        in_specs=[vmem, vmem, vmem, vmem, vmem],
        out_specs=(vmem, vmem),
    )(x2d, packed["prow"], packed["pcol"], packed["w1"], noise)

    return ibx, kl[0, 0]


if __name__ == "__main__":
    key = jax.random.PRNGKey(0)
    k_x, k_p, k_n = jax.random.split(key, 3)
    B = 2
    x = jax.random.normal(k_x, (B, 1, L), jnp.float32)
    params = init_params(k_p)
    packed = pack_params(params)                              # pack once, reuse every step
    noise = jax.random.uniform(k_n, (B, C, H), jnp.float32)   # stands in for torch.rand_like

    ib_x, kl_loss = independent_cnn_forward(x, packed, noise)
    ib_x, kl_loss = jax.block_until_ready((ib_x, kl_loss))

    assert ib_x.shape == (B, C, H) and ib_x.dtype == jnp.float32
    assert kl_loss.shape == () and bool(jnp.isfinite(kl_loss))
    print("KERNEL_OK")
</pallas_src>

<mosaic_0001>
module attributes {stable_mosaic.version = 11 : i64} {
  func.func @_independent_cnn_kernel(%arg0: memref<2x600xf32, #tpu.memory_space<vmem>>, %arg1: memref<4x160xf32, #tpu.memory_space<vmem>>, %arg2: memref<30x2xf32, #tpu.memory_space<vmem>>, %arg3: memref<150x128xf32, #tpu.memory_space<vmem>>, %arg4: memref<2x30x150xf32, #tpu.memory_space<vmem>>, %arg5: memref<2x30x150xf32, #tpu.memory_space<vmem>>, %arg6: memref<1x1xf32, #tpu.memory_space<vmem>>) attributes {dimension_semantics = [], scalar_prefetch = 0 : i64, scratch_operands = 0 : i64, tpu.core_type = #tpu.core_type<tc>} {
    %c0 = arith.constant 0 : index
    %c0_0 = arith.constant 0 : index
    %0 = vector.load %arg1[%c0, %c0_0] : memref<4x160xf32, #tpu.memory_space<vmem>>, vector<1x150xf32>
    %c1 = arith.constant 1 : index
    %c0_1 = arith.constant 0 : index
    %1 = vector.load %arg1[%c1, %c0_1] : memref<4x160xf32, #tpu.memory_space<vmem>>, vector<1x150xf32>
    %c2 = arith.constant 2 : index
    %c0_2 = arith.constant 0 : index
    %2 = vector.load %arg1[%c2, %c0_2] : memref<4x160xf32, #tpu.memory_space<vmem>>, vector<1x128xf32>
    %c3 = arith.constant 3 : index
    %c0_3 = arith.constant 0 : index
    %3 = vector.load %arg1[%c3, %c0_3] : memref<4x160xf32, #tpu.memory_space<vmem>>, vector<1x128xf32>
    %c3_4 = arith.constant 3 : index
    %c128 = arith.constant 128 : index
    %4 = vector.load %arg1[%c3_4, %c128] : memref<4x160xf32, #tpu.memory_space<vmem>>, vector<1x1xf32>
    %c0_5 = arith.constant 0 : index
    %c0_6 = arith.constant 0 : index
    %5 = vector.load %arg2[%c0_5, %c0_6] : memref<30x2xf32, #tpu.memory_space<vmem>>, vector<30x1xf32>
    %c0_7 = arith.constant 0 : index
    %c1_8 = arith.constant 1 : index
    %6 = vector.load %arg2[%c0_7, %c1_8] : memref<30x2xf32, #tpu.memory_space<vmem>>, vector<30x1xf32>
    %7 = tpu.iota {dimensions = array<i32: 1>} : vector<2x600xi32>
    %c299_i32 = arith.constant 299 : i32
    %8 = vector.broadcast %c299_i32 : i32 to vector<2x600xi32>
    %9 = arith.cmpi eq, %7, %8 : vector<2x600xi32>
    %c300_i32 = arith.constant 300 : i32
    %10 = vector.broadcast %c300_i32 : i32 to vector<2x600xi32>
    %11 = arith.cmpi eq, %7, %10 : vector<2x600xi32>
    %12 = arith.ori %9, %11 : vector<2x600xi1>
    %c0_9 = arith.constant 0 : index
    %c0_10 = arith.constant 0 : index
    %13 = vector.load %arg0[%c0_9, %c0_10] : memref<2x600xf32, #tpu.memory_space<vmem>>, vector<2x600xf32>
    %cst = arith.constant 0.000000e+00 : f32
    %14 = vector.broadcast %cst : f32 to vector<2x600xf32>
    %15 = arith.select %12, %13, %14 : vector<2x600xi1>, vector<2x600xf32>
    %cst_11 = arith.constant dense<0.000000e+00> : vector<2xf32>
    %16 = vector.multi_reduction <add>, %15, %cst_11 [1] : vector<2x600xf32> to vector<2xf32>
    %17 = vector.shape_cast %16 : vector<2xf32> to vector<2x1xf32>
    %cst_12 = arith.constant 5.000000e-01 : f32
    %18 = vector.broadcast %cst_12 : f32 to vector<2x1xf32>
    %19 = arith.mulf %18, %17 : vector<2x1xf32>
    %20 = vector.extract_strided_slice %19 {offsets = [0, 0], sizes = [1, 1], strides = [1, 1]} : vector<2x1xf32> to vector<1x1xf32>
    %21 = vector.broadcast %20 : vector<1x1xf32> to vector<1x150xf32>
    %22 = arith.mulf %21, %0 : vector<1x150xf32>
    %23 = arith.addf %22, %1 : vector<1x150xf32>
    %24 = vector.extract_strided_slice %19 {offsets = [1, 0], sizes = [1, 1], strides = [1, 1]} : vector<2x1xf32> to vector<1x1xf32>
    %25 = vector.broadcast %24 : vector<1x1xf32> to vector<1x150xf32>
    %26 = arith.mulf %25, %0 : vector<1x150xf32>
    %27 = arith.addf %26, %1 : vector<1x150xf32>
    %cst_13 = arith.constant dense<0.000000e+00> : vector<1xf32>
    %28 = vector.multi_reduction <add>, %23, %cst_13 [1] : vector<1x150xf32> to vector<1xf32>
    %29 = vector.shape_cast %28 : vector<1xf32> to vector<1x1xf32>
    %cst_14 = arith.constant dense<0.000000e+00> : vector<1xf32>
    %30 = vector.multi_reduction <add>, %27, %cst_14 [1] : vector<1x150xf32> to vector<1xf32>
    %31 = vector.shape_cast %30 : vector<1xf32> to vector<1x1xf32>
    %32 = arith.addf %29, %31 : vector<1x1xf32>
    %cst_15 = arith.constant 0.00333333341 : f32
    %33 = vector.broadcast %cst_15 : f32 to vector<1x1xf32>
    %34 = arith.mulf %32, %33 : vector<1x1xf32>
    %35 = vector.broadcast %34 : vector<1x1xf32> to vector<1x150xf32>
    %36 = arith.subf %23, %35 : vector<1x150xf32>
    %37 = vector.broadcast %34 : vector<1x1xf32> to vector<1x150xf32>
    %38 = arith.subf %27, %37 : vector<1x150xf32>
    %39 = arith.mulf %36, %36 : vector<1x150xf32>
    %cst_16 = arith.constant dense<0.000000e+00> : vector<1xf32>
    %40 = vector.multi_reduction <add>, %39, %cst_16 [1] : vector<1x150xf32> to vector<1xf32>
    %41 = vector.shape_cast %40 : vector<1xf32> to vector<1x1xf32>
    %42 = arith.mulf %38, %38 : vector<1x150xf32>
    %cst_17 = arith.constant dense<0.000000e+00> : vector<1xf32>
    %43 = vector.multi_reduction <add>, %42, %cst_17 [1] : vector<1x150xf32> to vector<1xf32>
    %44 = vector.shape_cast %43 : vector<1xf32> to vector<1x1xf32>
    %45 = arith.addf %41, %44 : vector<1x1xf32>
    %cst_18 = arith.constant 0.00333333341 : f32
    %46 = vector.broadcast %cst_18 : f32 to vector<1x1xf32>
    %47 = arith.mulf %45, %46 : vector<1x1xf32>
    %cst_19 = arith.constant 9.99999974E-6 : f32
    %48 = vector.broadcast %cst_19 : f32 to vector<1x1xf32>
    %49 = arith.addf %47, %48 : vector<1x1xf32>
    %50 = math.rsqrt %49 : vector<1x1xf32>
    %51 = vector.broadcast %50 : vector<1x1xf32> to vector<30x1xf32>
    %52 = arith.mulf %5, %51 : vector<30x1xf32>
    %cst_20 = arith.constant 0.000000e+00 : f32
    %53 = vector.broadcast %cst_20 : f32 to vector<1x1xf32>
    %54 = vector.broadcast %36 : vector<1x150xf32> to vector<30x150xf32>
    %55 = vector.broadcast %52 : vector<30x1xf32> to vector<30x150xf32>
    %56 = arith.mulf %54, %55 : vector<30x150xf32>
    %57 = vector.broadcast %6 : vector<30x1xf32> to vector<30x150xf32>
    %58 = arith.addf %56, %57 : vector<30x150xf32>
    %cst_21 = arith.constant 0.000000e+00 : f32
    %59 = vector.broadcast %cst_21 : f32 to vector<30x150xf32>
    %60 = arith.maximumf %58, %59 : vector<30x150xf32>
    %cst_22 = arith.constant dense<0.000000e+00> : vector<30xf32>
    %61 = vector.multi_reduction <add>, %60, %cst_22 [1] : vector<30x150xf32> to vector<30xf32>
    %62 = vector.shape_cast %61 : vector<30xf32> to vector<30x1xf32>
    %cst_23 = arith.constant 0.00666666683 : f32
    %63 = vector.broadcast %cst_23 : f32 to vector<30x1xf32>
    %64 = arith.mulf %62, %63 : vector<30x1xf32>
    %65 = vector.broadcast %64 : vector<30x1xf32> to vector<30x150xf32>
    %66 = arith.subf %60, %65 : vector<30x150xf32>
    %67 = arith.mulf %66, %66 : vector<30x150xf32>
    %cst_24 = arith.constant dense<0.000000e+00> : vector<30xf32>
    %68 = vector.multi_reduction <add>, %67, %cst_24 [1] : vector<30x150xf32> to vector<30xf32>
    %69 = vector.shape_cast %68 : vector<30xf32> to vector<30x1xf32>
    %cst_25 = arith.constant 0.00671140943 : f32
    %70 = vector.broadcast %cst_25 : f32 to vector<30x1xf32>
    %71 = arith.mulf %69, %70 : vector<30x1xf32>
    %72 = math.sqrt %71 : vector<30x1xf32>
    %c0_26 = arith.constant 0 : index
    %c0_27 = arith.constant 0 : index
    %73 = vector.load %arg3[%c0_26, %c0_27] : memref<150x128xf32, #tpu.memory_space<vmem>>, vector<150x128xf32>
    %cst_28 = arith.constant dense<0.000000e+00> : vector<30x128xf32>
    %74 = tpu.matmul %60, %73, %cst_28 {dimension_numbers = #tpu.dot_dimension_numbers<[1], [0], [0], [1], [0, 0, 1, 1], [], []>} : vector<30x150xf32>, vector<150x128xf32>, vector<30x128xf32> -> vector<30x128xf32>
    %75 = vector.broadcast %2 : vector<1x128xf32> to vector<30x128xf32>
    %76 = arith.addf %74, %75 : vector<30x128xf32>
    %cst_29 = arith.constant 0.000000e+00 : f32
    %77 = vector.broadcast %cst_29 : f32 to vector<30x128xf32>
    %78 = arith.maximumf %76, %77 : vector<30x128xf32>
    %79 = vector.broadcast %3 : vector<1x128xf32> to vector<30x128xf32>
    %80 = arith.mulf %78, %79 : vector<30x128xf32>
    %cst_30 = arith.constant dense<0.000000e+00> : vector<30xf32>
    %81 = vector.multi_reduction <add>, %80, %cst_30 [1] : vector<30x128xf32> to vector<30xf32>
    %82 = vector.shape_cast %81 : vector<30xf32> to vector<30x1xf32>
    %83 = vector.broadcast %4 : vector<1x1xf32> to vector<30x1xf32>
    %84 = arith.addf %82, %83 : vector<30x1xf32>
    %85 = arith.negf %84 : vector<30x1xf32>
    %86 = math.exp %85 : vector<30x1xf32>
    %cst_31 = arith.constant 1.000000e+00 : f32
    %87 = vector.broadcast %cst_31 : f32 to vector<30x1xf32>
    %88 = arith.addf %87, %86 : vector<30x1xf32>
    %89 = arith.divf %87, %88 : vector<30x1xf32>
    %cst_32 = arith.constant 1.000000e+00 : f32
    %90 = vector.broadcast %cst_32 : f32 to vector<30x1xf32>
    %91 = arith.subf %90, %89 : vector<30x1xf32>
    %92 = arith.mulf %91, %72 : vector<30x1xf32>
    %93 = vector.broadcast %89 : vector<30x1xf32> to vector<30x150xf32>
    %94 = arith.mulf %60, %93 : vector<30x150xf32>
    %95 = arith.mulf %91, %64 : vector<30x1xf32>
    %96 = vector.broadcast %95 : vector<30x1xf32> to vector<30x150xf32>
    %97 = arith.addf %94, %96 : vector<30x150xf32>
    %c0_33 = arith.constant 0 : index
    %c0_34 = arith.constant 0 : index
    %c0_35 = arith.constant 0 : index
    %98 = vector.load %arg4[%c0_33, %c0_34, %c0_35] : memref<2x30x150xf32, #tpu.memory_space<vmem>>, vector<1x30x150xf32>
    %99 = vector.shape_cast %98 : vector<1x30x150xf32> to vector<30x150xf32>
    %100 = vector.broadcast %92 : vector<30x1xf32> to vector<30x150xf32>
    %101 = arith.mulf %99, %100 : vector<30x150xf32>
    %102 = arith.addf %97, %101 : vector<30x150xf32>
    %c0_36 = arith.constant 0 : index
    %c0_37 = arith.constant 0 : index
    %c0_38 = arith.constant 0 : index
    %103 = vector.load %arg5[%c0_36, %c0_37, %c0_38] : memref<2x30x150xf32, #tpu.memory_space<vmem>>, vector<1x30x150xf32>
    %104 = vector.shape_cast %103 : vector<1x30x150xf32> to vector<30x150xf32>
    %105 = vector.shape_cast %102 : vector<30x150xf32> to vector<1x30x150xf32>
    tpu.vector_store %arg5[%c0_36, %c0_37, %c0_38], %105 {strides = array<i32>} : memref<2x30x150xf32, #tpu.memory_space<vmem>>, vector<1x30x150xf32>,
    %cst_39 = arith.constant 9.99999993E-9 : f32
    %106 = vector.broadcast %cst_39 : f32 to vector<30x1xf32>
    %107 = arith.addf %72, %106 : vector<30x1xf32>
    %cst_40 = arith.constant 9.99999993E-9 : f32
    %108 = vector.broadcast %cst_40 : f32 to vector<30x1xf32>
    %109 = arith.addf %72, %108 : vector<30x1xf32>
    %110 = arith.mulf %107, %109 : vector<30x1xf32>
    %cst_41 = arith.constant 1.000000e+00 : f32
    %111 = vector.broadcast %cst_41 : f32 to vector<30x1xf32>
    %112 = arith.divf %111, %110 : vector<30x1xf32>
    %113 = arith.mulf %92, %92 : vector<30x1xf32>
    %114 = arith.mulf %113, %112 : vector<30x1xf32>
    %115 = arith.mulf %72, %72 : vector<30x1xf32>
    %cst_42 = arith.constant 9.99999993E-9 : f32
    %116 = vector.broadcast %cst_42 : f32 to vector<30x1xf32>
    %117 = arith.addf %92, %116 : vector<30x1xf32>
    %cst_43 = arith.constant 9.99999993E-9 : f32
    %118 = vector.broadcast %cst_43 : f32 to vector<30x1xf32>
    %119 = arith.addf %92, %118 : vector<30x1xf32>
    %120 = arith.mulf %117, %119 : vector<30x1xf32>
    %121 = arith.divf %115, %120 : vector<30x1xf32>
    %122 = arith.addf %114, %121 : vector<30x1xf32>
    %cst_44 = arith.constant 1.000000e+00 : f32
    %123 = vector.broadcast %cst_44 : f32 to vector<30x1xf32>
    %124 = arith.subf %122, %123 : vector<30x1xf32>
    %cst_45 = arith.constant 5.000000e-01 : f32
    %125 = vector.broadcast %cst_45 : f32 to vector<30x1xf32>
    %126 = arith.mulf %125, %124 : vector<30x1xf32>
    %127 = arith.mulf %89, %89 : vector<30x1xf32>
    %128 = arith.mulf %127, %69 : vector<30x1xf32>
    %129 = arith.mulf %128, %112 : vector<30x1xf32>
    %cst_46 = arith.constant 1.500000e+02 : f32
    %130 = vector.broadcast %cst_46 : f32 to vector<30x1xf32>
    %131 = arith.mulf %126, %130 : vector<30x1xf32>
    %132 = arith.addf %131, %129 : vector<30x1xf32>
    %cst_47 = arith.constant dense<0.000000e+00> : vector<1xf32>
    %133 = vector.multi_reduction <add>, %132, %cst_47 [0] : vector<30x1xf32> to vector<1xf32>
    %134 = vector.shape_cast %133 : vector<1xf32> to vector<1x1xf32>
    %135 = arith.addf %53, %134 : vector<1x1xf32>
    %136 = vector.broadcast %38 : vector<1x150xf32> to vector<30x150xf32>
    %137 = vector.broadcast %52 : vector<30x1xf32> to vector<30x150xf32>
    %138 = arith.mulf %136, %137 : vector<30x150xf32>
    %139 = vector.broadcast %6 : vector<30x1xf32> to vector<30x150xf32>
    %140 = arith.addf %138, %139 : vector<30x150xf32>
    %cst_48 = arith.constant 0.000000e+00 : f32
    %141 = vector.broadcast %cst_48 : f32 to vector<30x150xf32>
    %142 = arith.maximumf %140, %141 : vector<30x150xf32>
    %cst_49 = arith.constant dense<0.000000e+00> : vector<30xf32>
    %143 = vector.multi_reduction <add>, %142, %cst_49 [1] : vector<30x150xf32> to vector<30xf32>
    %144 = vector.shape_cast %143 : vector<30xf32> to vector<30x1xf32>
    %cst_50 = arith.constant 0.00666666683 : f32
    %145 = vector.broadcast %cst_50 : f32 to vector<30x1xf32>
    %146 = arith.mulf %144, %145 : vector<30x1xf32>
    %147 = vector.broadcast %146 : vector<30x1xf32> to vector<30x150xf32>
    %148 = arith.subf %142, %147 : vector<30x150xf32>
    %149 = arith.mulf %148, %148 : vector<30x150xf32>
    %cst_51 = arith.constant dense<0.000000e+00> : vector<30xf32>
    %150 = vector.multi_reduction <add>, %149, %cst_51 [1] : vector<30x150xf32> to vector<30xf32>
    %151 = vector.shape_cast %150 : vector<30xf32> to vector<30x1xf32>
    %cst_52 = arith.constant 0.00671140943 : f32
    %152 = vector.broadcast %cst_52 : f32 to vector<30x1xf32>
    %153 = arith.mulf %151, %152 : vector<30x1xf32>
    %154 = math.sqrt %153 : vector<30x1xf32>
    %c0_53 = arith.constant 0 : index
    %c0_54 = arith.constant 0 : index
    %155 = vector.load %arg3[%c0_53, %c0_54] : memref<150x128xf32, #tpu.memory_space<vmem>>, vector<150x128xf32>
    %cst_55 = arith.constant dense<0.000000e+00> : vector<30x128xf32>
    %156 = tpu.matmul %142, %155, %cst_55 {dimension_numbers = #tpu.dot_dimension_numbers<[1], [0], [0], [1], [0, 0, 1, 1], [], []>} : vector<30x150xf32>, vector<150x128xf32>, vector<30x128xf32> -> vector<30x128xf32>
    %157 = vector.broadcast %2 : vector<1x128xf32> to vector<30x128xf32>
    %158 = arith.addf %156, %157 : vector<30x128xf32>
    %cst_56 = arith.constant 0.000000e+00 : f32
    %159 = vector.broadcast %cst_56 : f32 to vector<30x128xf32>
    %160 = arith.maximumf %158, %159 : vector<30x128xf32>
    %161 = vector.broadcast %3 : vector<1x128xf32> to vector<30x128xf32>
    %162 = arith.mulf %160, %161 : vector<30x128xf32>
    %cst_57 = arith.constant dense<0.000000e+00> : vector<30xf32>
    %163 = vector.multi_reduction <add>, %162, %cst_57 [1] : vector<30x128xf32> to vector<30xf32>
    %164 = vector.shape_cast %163 : vector<30xf32> to vector<30x1xf32>
    %165 = vector.broadcast %4 : vector<1x1xf32> to vector<30x1xf32>
    %166 = arith.addf %164, %165 : vector<30x1xf32>
    %167 = arith.negf %166 : vector<30x1xf32>
    %168 = math.exp %167 : vector<30x1xf32>
    %cst_58 = arith.constant 1.000000e+00 : f32
    %169 = vector.broadcast %cst_58 : f32 to vector<30x1xf32>
    %170 = arith.addf %169, %168 : vector<30x1xf32>
    %171 = arith.divf %169, %170 : vector<30x1xf32>
    %cst_59 = arith.constant 1.000000e+00 : f32
    %172 = vector.broadcast %cst_59 : f32 to vector<30x1xf32>
    %173 = arith.subf %172, %171 : vector<30x1xf32>
    %174 = arith.mulf %173, %154 : vector<30x1xf32>
    %175 = vector.broadcast %171 : vector<30x1xf32> to vector<30x150xf32>
    %176 = arith.mulf %142, %175 : vector<30x150xf32>
    %177 = arith.mulf %173, %146 : vector<30x1xf32>
    %178 = vector.broadcast %177 : vector<30x1xf32> to vector<30x150xf32>
    %179 = arith.addf %176, %178 : vector<30x150xf32>
    %c1_60 = arith.constant 1 : index
    %c0_61 = arith.constant 0 : index
    %c0_62 = arith.constant 0 : index
    %180 = vector.load %arg4[%c1_60, %c0_61, %c0_62] : memref<2x30x150xf32, #tpu.memory_space<vmem>>, vector<1x30x150xf32>
    %181 = vector.shape_cast %180 : vector<1x30x150xf32> to vector<30x150xf32>
    %182 = vector.broadcast %174 : vector<30x1xf32> to vector<30x150xf32>
    %183 = arith.mulf %181, %182 : vector<30x150xf32>
    %184 = arith.addf %179, %183 : vector<30x150xf32>
    %c1_63 = arith.constant 1 : index
    %c0_64 = arith.constant 0 : index
    %c0_65 = arith.constant 0 : index
    %185 = vector.load %arg5[%c1_63, %c0_64, %c0_65] : memref<2x30x150xf32, #tpu.memory_space<vmem>>, vector<1x30x150xf32>
    %186 = vector.shape_cast %185 : vector<1x30x150xf32> to vector<30x150xf32>
    %187 = vector.shape_cast %184 : vector<30x150xf32> to vector<1x30x150xf32>
    tpu.vector_store %arg5[%c1_63, %c0_64, %c0_65], %187 {strides = array<i32>} : memref<2x30x150xf32, #tpu.memory_space<vmem>>, vector<1x30x150xf32>,
    %cst_66 = arith.constant 9.99999993E-9 : f32
    %188 = vector.broadcast %cst_66 : f32 to vector<30x1xf32>
    %189 = arith.addf %154, %188 : vector<30x1xf32>
    %cst_67 = arith.constant 9.99999993E-9 : f32
    %190 = vector.broadcast %cst_67 : f32 to vector<30x1xf32>
    %191 = arith.addf %154, %190 : vector<30x1xf32>
    %192 = arith.mulf %189, %191 : vector<30x1xf32>
    %cst_68 = arith.constant 1.000000e+00 : f32
    %193 = vector.broadcast %cst_68 : f32 to vector<30x1xf32>
    %194 = arith.divf %193, %192 : vector<30x1xf32>
    %195 = arith.mulf %174, %174 : vector<30x1xf32>
    %196 = arith.mulf %195, %194 : vector<30x1xf32>
    %197 = arith.mulf %154, %154 : vector<30x1xf32>
    %cst_69 = arith.constant 9.99999993E-9 : f32
    %198 = vector.broadcast %cst_69 : f32 to vector<30x1xf32>
    %199 = arith.addf %174, %198 : vector<30x1xf32>
    %cst_70 = arith.constant 9.99999993E-9 : f32
    %200 = vector.broadcast %cst_70 : f32 to vector<30x1xf32>
    %201 = arith.addf %174, %200 : vector<30x1xf32>
    %202 = arith.mulf %199, %201 : vector<30x1xf32>
    %203 = arith.divf %197, %202 : vector<30x1xf32>
    %204 = arith.addf %196, %203 : vector<30x1xf32>
    %cst_71 = arith.constant 1.000000e+00 : f32
    %205 = vector.broadcast %cst_71 : f32 to vector<30x1xf32>
    %206 = arith.subf %204, %205 : vector<30x1xf32>
    %cst_72 = arith.constant 5.000000e-01 : f32
    %207 = vector.broadcast %cst_72 : f32 to vector<30x1xf32>
    %208 = arith.mulf %207, %206 : vector<30x1xf32>
    %209 = arith.mulf %171, %171 : vector<30x1xf32>
    %210 = arith.mulf %209, %151 : vector<30x1xf32>
    %211 = arith.mulf %210, %194 : vector<30x1xf32>
    %cst_73 = arith.constant 1.500000e+02 : f32
    %212 = vector.broadcast %cst_73 : f32 to vector<30x1xf32>
    %213 = arith.mulf %208, %212 : vector<30x1xf32>
    %214 = arith.addf %213, %211 : vector<30x1xf32>
    %cst_74 = arith.constant dense<0.000000e+00> : vector<1xf32>
    %215 = vector.multi_reduction <add>, %214, %cst_74 [0] : vector<30x1xf32> to vector<1xf32>
    %216 = vector.shape_cast %215 : vector<1xf32> to vector<1x1xf32>
    %217 = arith.addf %135, %216 : vector<1x1xf32>
    %cst_75 = arith.constant 1.11111112E-4 : f32
    %218 = vector.broadcast %cst_75 : f32 to vector<1x1xf32>
    %219 = arith.mulf %217, %218 : vector<1x1xf32>
    %c0_76 = arith.constant 0 : index
    %c0_77 = arith.constant 0 : index
    %220 = vector.load %arg6[%c0_76, %c0_77] : memref<1x1xf32, #tpu.memory_space<vmem>>, vector<1x1xf32>
    tpu.vector_store %arg6[%c0_76, %c0_77], %219 {strides = array<i32>} : memref<1x1xf32, #tpu.memory_space<vmem>>, vector<1x1xf32>,
    return
  }
}

</mosaic_0001>

<bundles_post_ra>
// kernel: independent_cnn_forward.1
= control target key start
LH: loop header
LB: loop body
LE: loop exit
PB: predicated region body
PF: predicated region fallthrough
CT: control target
= control target key end

     0   :  { %v33_v0 = vlaneseq  ;;  %v1418_v1 = vmov 1983009808   ;;  %s2220_s0 = inlined_call_operand.vmem [shape: f32[2,600], index: 0, kind: input, shape index: {}]   ;;  %s2221_s1 = inlined_call_operand.vmem [shape: f32[4,160], index: 1, kind: input, shape index: {}]   ;;  %s2222_s2 = inlined_call_operand.vmem [shape: f32[30,2], index: 2, kind: input, shape index: {}]   ;;  %s2223_s3 = inlined_call_operand.vmem [shape: f32[150,128], index: 3, kind: input, shape index: {}]   ;;  %s2224_s4 = inlined_call_operand.vmem [shape: f32[2,30,150], index: 4, kind: input, shape index: {}]   ;;  %s2225_s5 = inlined_call_operand.vmem [shape: f32[2,30,150], index: 5, kind: output, shape index: {0}]   ;;  %s2226_s6 = inlined_call_operand.hbm [shape: f32[1,1], index: 6, kind: output, shape index: {1}]  }
   0x1   :  { %v67_v2 = vunpack.c.l.s4 %v1418_v1 }
   0x2   :  { %12 = vsyncpa [#allocation3], 0  ;;  %v34_v3 = vand.u32 127, %v33_v0  ;;  %v70_v4 = vshrl.u32 %v33_v0, 7  ;;  %v1313_v5 = vld [vmem:[%s2220_s0 + $0x4] ss:$0 sps:$4 sm:$0xff]  }
   0x3   :  { %v68_v6 = vunpack.c.0.s8 %v67_v2  ;;  %vm92_vm3 = vcmask 1041408   ;;  %v23_v14 = vld [vmem:[%s2221_s1] ss:$4 sm:$0x3]  ;;  %vm139_vm4 = vcmask 1041409   ;;  %vm141_vm5 = vcmask 173057  }
   0x4   :  { %v36_v7 = vadd.s32 256, %v34_v3  ;;  %v1461_v12 = vsub.s32 0, %v70_v4  ;;  %v1463_v13 = vsub.s32 1, %v70_v4  ;;  %v1255_v15 = vld [vmem:[%s2221_s1 + $0x1] ss:$4 sm:$0x3] }
   0x5   :  { %v71_v8 = vsub.s32 %v68_v6, %v70_v4  ;;  %vm132_vm6 = vcmask 1040384   ;;  %vm134_vm7 = vcmask 172032   ;;  %v1419_v32 = vmov 0   ;;  %v1504_v54 = vld [vmem:[%s2222_s2] sm:$0xff]  ;;  %v1511_v56 = vld [vmem:[%s2222_s2 + $0x8] sm:$0xff]  ;;  %v1517_v57 = vld [vmem:[%s2222_s2 + $0x10] sm:$0xff] }
   0x6   :  { %vm41_vm0 = vcmp.eq.s32.totalorder %v36_v7, 299  ;;  %vm46_vm1 = vcmp.eq.s32.totalorder %v36_v7, 300  ;;  %v110_v16 = vrot.slane %v23_v14, %v1461_v12  ;;  %v114_v17 = vrot.slane %v23_v14, %v1463_v13  ;;  %1307 = vset.pattern.permute.xlu1 %v1419_v32  ;;  %1308 = vset.pattern.permute.xlu0 %v1419_v32  ;;  %v367_v58 = vld [vmem:[%s2223_s3 + $0x78] sm:$0xff]  ;;  %v366_v60 = vld [vmem:[%s2223_s3 + $0x70] sm:$0xff]  ;;  %v365_v61 = vld [vmem:[%s2223_s3 + $0x68] sm:$0xff] }
   0x7   :  { %vm51_vm2 = vmor %vm41_vm0, %vm46_vm1  ;;  %v72_v9 = vrot.slane %v1313_v5, %v71_v8  ;;  %v123_v20 = vrot.slane %v1255_v15, %v1461_v12  ;;  %v127_v21 = vrot.slane %v1255_v15, %v1463_v13  ;;  %v1420_v55 = vmov 1   ;;  %v364_v62 = vld [vmem:[%s2223_s3 + $0x60] sm:$0xff]  ;;  %v363_v63 = vld [vmem:[%s2223_s3 + $0x58] sm:$0xff] }
   0x8   :  { %v1421_v59 = vmov 0.0   ;;  %v362_v0 = vld [vmem:[%s2223_s3 + $0x50] sm:$0xff]  ;;  %v361_v1 = vld [vmem:[%s2223_s3 + $0x48] sm:$0xff]  ;;  %v360_v2 = vld [vmem:[%s2223_s3 + $0x40] sm:$0xff]  ;;  %vm276_vm8 = vcmask 1045504   ;;  %vm263_vm9 = vcmask 179200  }
   0x9   :  { %v89_v10 = vsel %vm51_vm2, %v72_v9, 0.0  ;;  %390 = vmatprep.subr.mxu0 %v1421_v59  ;;  %892 = vmatprep.subr.mxu1 %v1421_v59  ;;  %v359_v3 = vld [vmem:[%s2223_s3 + $0x38] sm:$0xff]  ;;  %v358_v4 = vld [vmem:[%s2223_s3 + $0x30] sm:$0xff]  ;;  %v357_v5 = vld [vmem:[%s2223_s3 + $0x28] sm:$0xff]  ;;  %vm278_vm10 = vcmask 177152  }
   0xa   :  { %v96_v11 = vsel %vm92_vm3, %v89_v10, 0.0  ;;  %391 = vmatpush1.msra.mxu0 %v367_v58  ;;  %893 = vmatpush1.msra.mxu1 %v367_v58  ;;  %v356_v6 = vld [vmem:[%s2223_s3 + $0x20] sm:$0xff]  ;;  %v355_v7 = vld [vmem:[%s2223_s3 + $0x18] sm:$0xff]  ;;  %v354_v8 = vld [vmem:[%s2223_s3 + $0x10] sm:$0xff] }
   0xb   :  { %103 = vadd.xlane.f32.xlu0 %v96_v11  ;;  %392 = vmatprep.subr.mxu0 %v1421_v59  ;;  %v353_v9 = vld [vmem:[%s2223_s3 + $0x8] sm:$0xff] }
   0xc   :  { %894 = vmatprep.subr.mxu1 %v1421_v59  ;;  %393 = vmatpush1.msra.mxu0 %v366_v60 }
   0xd   :  { %895 = vmatpush1.msra.mxu1 %v366_v60  ;;  %394 = vmatprep.subr.mxu0 %v1421_v59 }
   0xe   :  { %896 = vmatprep.subr.mxu1 %v1421_v59  ;;  %395 = vmatpush1.msra.mxu0 %v365_v61 }
   0xf   :  { %897 = vmatpush1.msra.mxu1 %v365_v61  ;;  %396 = vmatprep.subr.mxu0 %v1421_v59 }
  0x10   :  { %898 = vmatprep.subr.mxu1 %v1421_v59  ;;  %397 = vmatpush1.msra.mxu0 %v364_v62 }
  0x11   :  { %899 = vmatpush1.msra.mxu1 %v364_v62  ;;  %398 = vmatprep.subr.mxu0 %v1421_v59 }
  0x12   :  { %900 = vmatprep.subr.mxu1 %v1421_v59  ;;  %399 = vmatpush1.msra.mxu0 %v363_v63 }
  0x13   :  { %901 = vmatpush1.msra.mxu1 %v363_v63  ;;  %400 = vmatprep.subr.mxu0 %v1421_v59 }
  0x14   :  { %902 = vmatprep.subr.mxu1 %v1421_v59  ;;  %401 = vmatpush1.msra.mxu0 %v362_v0 }
  0x15   :  { %903 = vmatpush1.msra.mxu1 %v362_v0  ;;  %402 = vmatprep.subr.mxu0 %v1421_v59 }
  0x16   :  { %904 = vmatprep.subr.mxu1 %v1421_v59  ;;  %403 = vmatpush1.msra.mxu0 %v361_v1 }
  0x17   :  { %905 = vmatpush1.msra.mxu1 %v361_v1  ;;  %404 = vmatprep.subr.mxu0 %v1421_v59 }
  0x18   :  { %906 = vmatprep.subr.mxu1 %v1421_v59  ;;  %405 = vmatpush1.msra.mxu0 %v360_v2 }
  0x19   :  { %907 = vmatpush1.msra.mxu1 %v360_v2  ;;  %406 = vmatprep.subr.mxu0 %v1421_v59 }
  0x1a   :  { %908 = vmatprep.subr.mxu1 %v1421_v59  ;;  %407 = vmatpush1.msra.mxu0 %v359_v3 }
  0x1b   :  { %909 = vmatpush1.msra.mxu1 %v359_v3  ;;  %408 = vmatprep.subr.mxu0 %v1421_v59 }
  0x1c   :  { %910 = vmatprep.subr.mxu1 %v1421_v59  ;;  %409 = vmatpush1.msra.mxu0 %v358_v4 }
  0x1d   :  { %911 = vmatpush1.msra.mxu1 %v358_v4  ;;  %410 = vmatprep.subr.mxu0 %v1421_v59 }
  0x1e   :  { %912 = vmatprep.subr.mxu1 %v1421_v59  ;;  %411 = vmatpush1.msra.mxu0 %v357_v5 }
  0x1f   :  { %913 = vmatpush1.msra.mxu1 %v357_v5  ;;  %412 = vmatprep.subr.mxu0 %v1421_v59 }
  0x20   :  { %914 = vmatprep.subr.mxu1 %v1421_v59  ;;  %413 = vmatpush1.msra.mxu0 %v356_v6 }
  0x21   :  { %915 = vmatpush1.msra.mxu1 %v356_v6  ;;  %414 = vmatprep.subr.mxu0 %v1421_v59 }
  0x22   :  { %916 = vmatprep.subr.mxu1 %v1421_v59  ;;  %415 = vmatpush1.msra.mxu0 %v355_v7 }
  0x23   :  { %917 = vmatpush1.msra.mxu1 %v355_v7  ;;  %416 = vmatprep.subr.mxu0 %v1421_v59 }
  0x24   :  { %918 = vmatprep.subr.mxu1 %v1421_v59  ;;  %417 = vmatpush1.msra.mxu0 %v354_v8 }
  0x25   :  { %919 = vmatpush1.msra.mxu1 %v354_v8  ;;  %418 = vmatprep.subr.mxu0 %v1421_v59 }
  0x26   :  { %920 = vmatprep.subr.mxu1 %v1421_v59  ;;  %419 = vmatpush1.msra.mxu0 %v353_v9 }
  0x27   :  { %921 = vmatpush1.msra.mxu1 %v353_v9  ;;  %420 = vmatprep.subr.mxu0 %v1421_v59 }
  0x28   :  { %922 = vmatprep.subr.mxu1 %v1421_v59 }
  0x94   :  { %v104_v18 = vpop.xlane.xlu0 %103 }
  0x95   :  { %v105_v19 = vmul.f32 0.5, %v104_v18 }
  0x97   :  { %v117_v22 = vmul.f32 %v110_v16, %v105_v19  ;;  %v118_v23 = vmul.f32 %v114_v17, %v105_v19 }
  0x99   :  { %v130_v24 = vadd.f32 %v123_v20, %v117_v22  ;;  %v131_v25 = vadd.f32 %v127_v21, %v118_v23  ;;  %v352_v20 = vld [vmem:[%s2223_s3] sm:$0xff]  ;;  %v370_v23 = vld [vmem:[%s2223_s3 + $0x90] sm:$0x3f] }
  0x9a   :  { %421 = vmatpush1.msra.mxu0 %v352_v20  ;;  %923 = vmatpush1.msra.mxu1 %v352_v20 }
  0x9b   :  { %v140_v26 = vsel %vm139_vm4, %v130_v24, 0.0  ;;  %v142_v27 = vsel %vm141_vm5, %v131_v25, 0.0  ;;  %v133_v28 = vsel %vm132_vm6, %v130_v24, 0.0  ;;  %v135_v29 = vsel %vm134_vm7, %v131_v25, 0.0  ;;  %448 = vmatprep.subr.mxu0 %v1421_v59  ;;  %950 = vmatprep.subr.mxu1 %v1421_v59 }
  0x9c   :  { %v143_v30 = vadd.f32 %v142_v27, %v140_v26  ;;  %v136_v31 = vadd.f32 %v135_v29, %v133_v28  ;;  %1258 = vmatpush2.msk.msra.mxu0 %vm276_vm8, %v370_v23  ;;  %v368_v27 = vld [vmem:[%s2223_s3 + $0x80] sm:$0xff]  ;;  %v32_v28 = vld [vmem:[%s2222_s2 + $0x18] sm:$0x3f] }
  0x9d   :  { %450 = vmatprep.subr.mxu0 %v1421_v59 }
  0x9e   :  { %144 = vadd.xlane.f32.xlu0 %v143_v30  ;;  %137 = vadd.xlane.f32.xlu1 %v136_v31 }
 0x127   :  { %v145_v33 = vpop.xlane.xlu0 %144  ;;  %v138_v35 = vpop.xlane.xlu1 %137 }
 0x128   :  { %v147_v34 = vrot.slane %v145_v33, 1 }
 0x12a   :  { %v149_v36 = vadd.f32 %v147_v34, %v138_v35 }
 0x12c   :  { %v150_v37 = vmul.f32 0.0033333334, %v149_v36 }
 0x12e   :  { %153 = vperm.xlu1 %1307, %v150_v37  }
 0x132   :  { %1309 = vset.pattern.permute.xlu1 %v1420_v55 }
 0x133   :  { %229 = vperm.xlu1 %1309, %v1504_v54  }
 0x137   :  { %234 = vperm.xlu1 %1309, %v1511_v56  }
 0x13b   :  { %239 = vperm.xlu1 %1309, %v1517_v57  }
 0x13f   :  { %1310 = vset.pattern.permute.xlu1 %v1419_v32 }
 0x1a9   :  { %v154_v38 = vpop.permute.xlu1 %153 }
 0x1aa   :  { %v1481_v39 = vsub.f32 %v130_v24, %v154_v38  ;;  %v1483_v40 = vsub.f32 %v131_v25, %v154_v38  ;;  %v158_v41 = vrot.slane %v154_v38, 7 }
 0x1ac   :  { %v1485_v42 = vsub.f32 %v130_v24, %v158_v41  ;;  %v1487_v43 = vsub.f32 %v131_v25, %v158_v41  ;;  %v162_v46 = vmul.f32 %v1481_v39, %v1481_v39  ;;  %v163_v47 = vmul.f32 %v1483_v40, %v1483_v40  ;;  %v876_v24 = vld [vmem:[%s2223_s3 + $0x90] sm:$0x3f]  ;;  %v369_v25 = vld [vmem:[%s2223_s3 + $0x88] sm:$0xff] }
 0x1ad   :  { %1273 = vmatpush2.msk.msra.mxu1 %vm276_vm8, %v876_v24  ;;  %451 = vmatpush2.msra.mxu0 %v369_v25  ;;  %v194_v34 = vrot.slane %v1481_v39, %v1461_v12  ;;  %v198_v35 = vrot.slane %v1483_v40, %v1461_v12 }
 0x1ae   :  { %v169_v44 = vmul.f32 %v1485_v42, %v1485_v42  ;;  %v170_v45 = vmul.f32 %v1487_v43, %v1487_v43  ;;  %v164_v51 = vsel %vm132_vm6, %v162_v46, 0.0  ;;  %v165_v52 = vsel %vm134_vm7, %v163_v47, 0.0  ;;  %952 = vmatprep.subr.mxu1 %v1421_v59  ;;  %452 = vmatprep.subr.mxu0 %v1421_v59  ;;  %v230_v30 = vpop.permute.xlu1 %229 }
 0x1af   :  { %v166_v53 = vadd.f32 %v165_v52, %v164_v51  ;;  %953 = vmatpush2.msra.mxu1 %v369_v25  ;;  %453 = vmatpush2.msra.mxu0 %v368_v27  ;;  %v743_v36 = vrot.slane %v1485_v42, %v1463_v13  ;;  %v747_v37 = vrot.slane %v1487_v43, %v1463_v13 }
 0x1b0   :  { %v171_v48 = vsel %vm139_vm4, %v169_v44, 0.0  ;;  %v172_v49 = vsel %vm141_vm5, %v170_v45, 0.0  ;;  %954 = vmatprep.subr.mxu1 %v1421_v59 }
 0x1b1   :  { %v173_v50 = vadd.f32 %v172_v49, %v171_v48  ;;  %955 = vmatpush2.msra.mxu1 %v368_v27 }
 0x1b2   :  { %v235_v31 = vpop.permute.xlu1 %234 }
 0x1b3   :  { %174 = vadd.xlane.f32.xlu0 %v173_v50 }
 0x1b6   :  { %v240_v33 = vpop.permute.xlu1 %239 }
 0x1b7   :  { %167 = vadd.xlane.f32.xlu0 %v166_v53 }
 0x23c   :  { %v175_v10 = vpop.xlane.xlu0 %174 }
 0x23d   :  { %v177_v11 = vrot.slane %v175_v10, 1 }
 0x240   :  { %v168_v14 = vpop.xlane.xlu0 %167 }
 0x241   :  { %v179_v15 = vadd.f32 %v177_v11, %v168_v14 }
 0x243   :  { %v180_v16 = vmul.f32 0.0033333334, %v179_v15 }
 0x245   :  { %v181_v17 = vadd.f32 1e-05, %v180_v16 }
 0x247   :  { %1314 = vrsqrt.f32 %v181_v17 }
 0x254   :  { %v1315_v18 = vpop.eup %1314 }
 0x255   :  { %v186_v19 = vrot.slane %v1315_v18, %v1461_v12 }
 0x257   :  { %v187_v21 = vmul.f32 %v186_v19, %v1504_v54  ;;  %v188_v22 = vmul.f32 %v186_v19, %v1511_v56  ;;  %v189_v26 = vmul.f32 %v186_v19, %v1517_v57  ;;  %v190_v29 = vmul.f32 %v186_v19, %v32_v28 }
 0x259   :  { %206 = vperm.xlu1 %1310, %v188_v22   ;;  %201 = vperm.xlu0 %1308, %v187_v21  }
 0x25d   :  { %211 = vperm.xlu1 %1310, %v189_v26  }
 0x261   :  { %216 = vperm.xlu1 %1310, %v190_v29  }
 0x265   :  { %1311 = vset.pattern.permute.xlu1 %v1420_v55 }
 0x266   :  { %244 = vperm.xlu1 %1311, %v32_v28  }
 0x26a   :  { %1312 = vset.pattern.permute.xlu1 %v1419_v32 }
 0x2d4   :  { %v202_v38 = vpop.permute.xlu0 %201  ;;  %v207_v41 = vpop.permute.xlu1 %206 }
 0x2d5   :  { %v219_v44 = vmul.f32 %v202_v38, %v194_v34  ;;  %v220_v45 = vmul.f32 %v202_v38, %v198_v35  ;;  %v748_v32 = vmul.f32 %v743_v36, %v202_v38  ;;  %v749_v46 = vmul.f32 %v747_v37, %v202_v38 }
 0x2d6   :  { %v221_v47 = vmul.f32 %v207_v41, %v194_v34  ;;  %v222_v48 = vmul.f32 %v207_v41, %v198_v35  ;;  %v751_v49 = vmul.f32 %v747_v37, %v207_v41  ;;  %v750_v52 = vmul.f32 %v743_v36, %v207_v41 }
 0x2d7   :  { %v247_v50 = vadd.f32 %v230_v30, %v219_v44  ;;  %v248_v39 = vadd.f32 %v230_v30, %v220_v45  ;;  %v757_v51 = vadd.f32 %v749_v46, %v230_v30  ;;  %v756_v12 = vadd.f32 %v748_v32, %v230_v30 }
 0x2d8   :  { %v249_v40 = vadd.f32 %v235_v31, %v221_v47  ;;  %v250_v53 = vadd.f32 %v235_v31, %v222_v48  ;;  %v212_v42 = vpop.permute.xlu1 %211  ;;  %v759_v54 = vadd.f32 %v751_v49, %v235_v31  ;;  %v758_v61 = vadd.f32 %v750_v52, %v235_v31 }
 0x2d9   :  { %v223_v13 = vmul.f32 %v212_v42, %v194_v34  ;;  %v224_v43 = vmul.f32 %v212_v42, %v198_v35  ;;  %v753_v55 = vmul.f32 %v747_v37, %v212_v42  ;;  %v752_v56 = vmul.f32 %v743_v36, %v212_v42 }
 0x2da   :  { %v1638_v57 = vmax.f32 %v248_v39, 0.0  ;;  %v1640_v58 = vmax.f32 %v757_v51, 0.0  ;;  %v1642_v59 = vmax.f32 %v247_v50, 0.0  ;;  %v1644_v60 = vmax.f32 %v249_v40, 0.0 }
 0x2db   :  { %v251_v62 = vadd.f32 %v240_v33, %v223_v13  ;;  %v252_v63 = vadd.f32 %v240_v33, %v224_v43  ;;  %v761_v0 = vadd.f32 %v753_v55, %v240_v33  ;;  %v1650_v1 = vmax.f32 %v756_v12, 0.0 }
 0x2dc   :  { %1259 = vmatprep.mubr.msk.f32.mxu0 %vm263_vm9, %v1638_v57  ;;  %1274 = vmatprep.mubr.msk.f32.mxu1 %vm263_vm9, %v1640_v58  ;;  %v217_v2 = vpop.permute.xlu1 %216  ;;  %v1652_v3 = vmax.f32 %v250_v53, 0.0  ;;  %v264_v4 = vsel %vm263_vm9, %v1638_v57, 0.0  ;;  %v1657_v5 = vmax.f32 %v759_v54, 0.0  ;;  %v760_v6 = vadd.f32 %v752_v56, %v240_v33 }
 0x2dd   :  { %455 = vmatmul.mubr.f32.vlgmr.msra.gmra.mxu0 %v1642_v59  ;;  %957 = vmatmul.mubr.f32.vlgmr.msra.gmra.mxu1 %v1650_v1  ;;  %v265_v7 = vadd.f32 %v264_v4, %v1642_v59  ;;  %v1665_v9 = vmax.f32 %v251_v62, 0.0  ;;  %v225_v10 = vmul.f32 %v217_v2, %v194_v34  ;;  %v1670_v14 = vmax.f32 %v252_v63, 0.0  ;;  %v1257_v62 = vld [vmem:[%s2221_s1 + $0x2] ss:$0 sm:$0xff] }
 0x2de   :  { %1260 = vmatprep.mubr.msk.f32.mxu0 %vm263_vm9, %v1652_v3  ;;  %v268_v8 = vsel %vm263_vm9, %v1652_v3, 0.0  ;;  %1275 = vmatprep.mubr.msk.f32.mxu1 %vm263_vm9, %v1657_v5  ;;  %v226_v15 = vmul.f32 %v217_v2, %v198_v35  ;;  %v1672_v16 = vmax.f32 %v758_v61, 0.0  ;;  %v1674_v17 = vmax.f32 %v761_v0, 0.0 }
 0x2df   :  { %v269_v11 = vadd.f32 %v268_v8, %v1644_v60  ;;  %266 = vadd.xlane.f32.xlu1 %v265_v7  ;;  %v772_v18 = vsel %vm263_vm9, %v1640_v58, 0.0  ;;  %v755_v19 = vmul.f32 %v747_v37, %v217_v2  ;;  %v272_v21 = vsel %vm263_vm9, %v1670_v14, 0.0  ;;  %v1740_v8 = vld [vmem:[%s2221_s1 + $0x3] ss:$0 sm:$0xff] }
 0x2e0   :  { %2232 = vst [vmem:[#allocation5_spill] sm:$0xff] %v1674_v17  ;;  %v754_v22 = vmul.f32 %v743_v36, %v217_v2  ;;  %v773_v26 = vadd.f32 %v772_v18, %v1650_v1  ;;  %v273_v27 = vadd.f32 %v272_v21, %v1665_v9  ;;  %v1688_v28 = vmax.f32 %v760_v6, 0.0 }
 0x2e1   :  { %270 = vadd.xlane.f32.xlu0 %v269_v11  ;;  %460 = vmatmul.mubr.f32.gmra.mxu0 %v1644_v60  ;;  %v245_v20 = vpop.permute.xlu1 %244  ;;  %v780_v33 = vsel %vm263_vm9, %v1674_v17, 0.0  ;;  %v776_v44 = vsel %vm263_vm9, %v1657_v5, 0.0 }
 0x2e2   :  { %962 = vmatmul.mubr.f32.gmra.mxu1 %v1672_v16  ;;  %1261 = vmatprep.mubr.msk.f32.mxu0 %vm263_vm9, %v1670_v14  ;;  %v253_v23 = vadd.f32 %v245_v20, %v225_v10  ;;  %v254_v24 = vadd.f32 %v245_v20, %v226_v15  ;;  %v763_v25 = vadd.f32 %v755_v19, %v245_v20 }
 0x2e3   :  { %1276 = vmatprep.mubr.msk.f32.mxu1 %vm263_vm9, %v1674_v17  ;;  %2233 = vst [vmem:[#allocation6_spill] sm:$0xff] %v1688_v28  ;;  %v762_v31 = vadd.f32 %v754_v22, %v245_v20  ;;  %274 = vadd.xlane.f32.xlu1 %v273_v27  ;;  %v781_v37 = vadd.f32 %v780_v33, %v1688_v28 }
 0x2e4   :  { %v1690_v29 = vmax.f32 %v253_v23, 0.0  ;;  %v1692_v30 = vmax.f32 %v254_v24, 0.0  ;;  %v1696_v34 = vmax.f32 %v763_v25, 0.0  ;;  %v777_v45 = vadd.f32 %v776_v44, %v1672_v16 }
 0x2e5   :  { %774 = vadd.xlane.f32.xlu0 %v773_v26  ;;  %465 = vmatmul.mubr.f32.gmra.mxu0 %v1665_v9  ;;  %v1709_v41 = vmax.f32 %v762_v31, 0.0 }
 0x2e6   :  { %2234 = vst [vmem:[#allocation7_spill] sm:$0xff] %v1692_v30  ;;  %2235 = vst [vmem:[#allocation8_spill] sm:$0xff] %v1696_v34  ;;  %967 = vmatmul.mubr.f32.gmra.mxu1 %v1688_v28  ;;  %v277_v35 = vsel %vm276_vm8, %v1690_v29, 0.0  ;;  %v279_v36 = vsel %vm278_vm10, %v1692_v30, 0.0  ;;  %1262 = vmatprep.mubr.msk.f32.mxu0 %vm263_vm9, %v1692_v30  ;;  %v785_v46 = vsel %vm278_vm10, %v1696_v34, 0.0 }
 0x2e7   :  { %1277 = vmatprep.mubr.msk.f32.mxu1 %vm263_vm9, %v1696_v34  ;;  %v280_v38 = vadd.f32 %v279_v36, %v277_v35  ;;  %2236 = vst [vmem:[#allocation9_spill] sm:$0xff] %v1709_v41  ;;  %v784_v32 = vsel %vm276_vm8, %v1709_v41, 0.0 }
 0x2e8   :  { %v786_v47 = vadd.f32 %v785_v46, %v784_v32 }
 0x2e9   :  { %782 = vadd.xlane.f32.xlu0 %v781_v37  ;;  %281 = vadd.xlane.f32.xlu1 %v280_v38 }
 0x2ea   :  { %470 = vmatmul.mubr.f32.gmra.mxu0 %v1690_v29  ;;  %972 = vmatmul.mubr.f32.gmra.mxu1 %v1709_v41 }
 0x2ed   :  { %778 = vadd.xlane.f32.xlu1 %v777_v45 }
 0x2f1   :  { %787 = vadd.xlane.f32.xlu1 %v786_v47 }
 0x368   :  { %v267_v48 = vpop.xlane.xlu1 %266 }
 0x369   :  { %v1720_v50 = vmul.f32 0.006666667, %v267_v48 }
 0x36a   :  { %v271_v49 = vpop.xlane.xlu0 %270 }
 0x36b   :  { %v1722_v39 = vmul.f32 0.006666667, %v271_v49  ;;  %v287_v51 = vsub.f32 %v1642_v59, %v1720_v50  ;;  %v288_v52 = vsub.f32 %v1638_v57, %v1720_v50 }
 0x36c   :  { %v275_v63 = vpop.xlane.xlu1 %274 }
 0x36d   :  { %v289_v12 = vsub.f32 %v1644_v60, %v1722_v39  ;;  %v290_v40 = vsub.f32 %v1652_v3, %v1722_v39  ;;  %v295_v53 = vmul.f32 %v287_v51, %v287_v51  ;;  %v296_v42 = vmul.f32 %v288_v52, %v288_v52 }
 0x36e   :  { %v775_v23 = vpop.xlane.xlu0 %774  ;;  %v1743_v26 = vmul.f32 0.006666667, %v275_v63 }
 0x36f   :  { %v297_v54 = vmul.f32 %v289_v12, %v289_v12  ;;  %v298_v13 = vmul.f32 %v290_v40, %v290_v40  ;;  %v303_v43 = vsel %vm263_vm9, %v296_v42, 0.0  ;;  %v1745_v33 = vmul.f32 0.006666667, %v775_v23 }
 0x370   :  { %v304_v56 = vadd.f32 %v303_v43, %v295_v53  ;;  %v292_v51 = vsub.f32 %v1670_v14, %v1743_v26 }
 0x371   :  { %v307_v55 = vsel %vm263_vm9, %v298_v13, 0.0  ;;  %v794_v13 = vsub.f32 %v1640_v58, %v1745_v33 }
 0x372   :  { %v308_v61 = vadd.f32 %v307_v55, %v297_v54  ;;  %305 = vadd.xlane.f32.xlu0 %v304_v56  ;;  %v282_v15 = vpop.xlane.xlu1 %281  ;;  %v783_v52 = vpop.xlane.xlu0 %782  ;;  %v291_v54 = vsub.f32 %v1665_v9, %v1743_v26 }
 0x373   :  { %v1749_v47 = vmul.f32 0.006666667, %v282_v15  ;;  %v1759_v63 = vmul.f32 0.006666667, %v783_v52 }
 0x374   :  { %309 = vadd.xlane.f32.xlu1 %v308_v61 }
 0x376   :  { %v779_v45 = vpop.xlane.xlu1 %778 }
 0x39d   :  { %v456_v0 = vpop.f32.mrf.mxu0  ;;  %v958_v4 = vpop.f32.mrf.mxu1 }
 0x39e   :  { %v457_v2 = vadd.f32 %v1257_v62, %v456_v0  ;;  %v959_v6 = vadd.f32 %v1257_v62, %v958_v4  ;;  %v300_v4 = vmul.f32 %v292_v51, %v292_v51 }
 0x39f   :  { %v458_v7 = vpop.f32.mrf.mxu0  ;;  %v960_v11 = vpop.f32.mrf.mxu1 }
 0x3a0   :  { %v475_v10 = vmax.f32 %v457_v2, 0.0  ;;  %v977_v19 = vmax.f32 %v959_v6, 0.0  ;;  %v293_v6 = vsub.f32 %v1690_v29, %v1749_v47  ;;  %v294_v7 = vsub.f32 %v1692_v30, %v1749_v47 }
 0x3a1   :  { %v461_v18 = vpop.f32.mrf.mxu0  ;;  %v311_v23 = vsel %vm263_vm9, %v300_v4, 0.0 }
 0x3a2   :  { %v462_v20 = vadd.f32 %v1257_v62, %v461_v18  ;;  %v963_v21 = vpop.f32.mrf.mxu1  ;;  %v483_v22 = vmul.f32 %v1740_v8, %v475_v10  ;;  %v981_v44 = vmul.f32 %v1740_v8, %v977_v19  ;;  %v1765_v10 = vmul.f32 0.006666667, %v779_v45 }
 0x3a3   :  { %v964_v24 = vadd.f32 %v1257_v62, %v963_v21  ;;  %v463_v25 = vpop.f32.mrf.mxu0  ;;  %v793_v18 = vsub.f32 %v1650_v1, %v1745_v33  ;;  %v299_v21 = vmul.f32 %v291_v54, %v291_v54 }
 0x3a4   :  { %v476_v27 = vmax.f32 %v462_v20, 0.0  ;;  %v965_v31 = vpop.f32.mrf.mxu1  ;;  %487 = vadd.xlane.f32.xlu0 %v483_v22  ;;  %v802_v22 = vmul.f32 %v794_v13, %v794_v13  ;;  %v302_v25 = vmul.f32 %v294_v7, %v294_v7  ;;  %v795_v51 = vsub.f32 %v1672_v16, %v1765_v10 }
 0x3a5   :  { %v978_v35 = vmax.f32 %v964_v24, 0.0  ;;  %v466_v36 = vpop.f32.mrf.mxu0  ;;  %v301_v24 = vmul.f32 %v293_v6, %v293_v6 }
 0x3a6   :  { %v968_v37 = vpop.f32.mrf.mxu1  ;;  %v484_v38 = vmul.f32 %v1740_v8, %v476_v27  ;;  %v467_v32 = vadd.f32 %v1257_v62, %v466_v36  ;;  %v798_v27 = vsub.f32 %v1674_v17, %v1759_v63  ;;  %v809_v45 = vsel %vm263_vm9, %v802_v22, 0.0 }
 0x3a7   :  { %v969_v46 = vadd.f32 %v1257_v62, %v968_v37  ;;  %v468_v48 = vpop.f32.mrf.mxu0  ;;  %v982_v42 = vmul.f32 %v1740_v8, %v978_v35  ;;  %v796_v37 = vsub.f32 %v1657_v5, %v1765_v10 }
 0x3a8   :  { %v970_v49 = vpop.f32.mrf.mxu1  ;;  %489 = vadd.xlane.f32.xlu1 %v484_v38  ;;  %985 = vadd.xlane.f32.xlu0 %v981_v44  ;;  %v477_v12 = vmax.f32 %v467_v32, 0.0  ;;  %v312_v38 = vadd.f32 %v311_v23, %v299_v21  ;;  %v801_v44 = vmul.f32 %v793_v18, %v793_v18  ;;  %v797_v32 = vsub.f32 %v1688_v28, %v1759_v63 }
 0x3a9   :  { %v979_v43 = vmax.f32 %v969_v46, 0.0  ;;  %v315_v46 = vsel %vm276_vm8, %v301_v24, 0.0  ;;  %v316_v48 = vsel %vm278_vm10, %v302_v25, 0.0  ;;  %v806_v49 = vmul.f32 %v798_v27, %v798_v27 }
 0x3aa   :  { %v471_v40 = vpop.f32.mrf.mxu0  ;;  %v973_v53 = vpop.f32.mrf.mxu1  ;;  %v485_v61 = vmul.f32 %v1740_v8, %v477_v12  ;;  %v804_v52 = vmul.f32 %v796_v37, %v796_v37  ;;  %v317_v54 = vadd.f32 %v316_v48, %v315_v46 }
 0x3ab   :  { %v472_v55 = vadd.f32 %v1257_v62, %v471_v40  ;;  %v974_v56 = vadd.f32 %v1257_v62, %v973_v53  ;;  %v788_v62 = vpop.xlane.xlu1 %787  ;;  %v983_v19 = vmul.f32 %v1740_v8, %v979_v43  ;;  %v810_v53 = vadd.f32 %v809_v45, %v801_v44 }
 0x3ac   :  { %v473_v0 = vpop.f32.mrf.mxu0  ;;  %v975_v2 = vpop.f32.mrf.mxu1  ;;  %987 = vadd.xlane.f32.xlu1 %v982_v42  ;;  %491 = vadd.xlane.f32.xlu0 %v485_v61  ;;  %v1774_v31 = vmul.f32 0.006666667, %v788_v62  ;;  %v805_v42 = vmul.f32 %v797_v32, %v797_v32  ;;  %v817_v13 = vsel %vm263_vm9, %v806_v49, 0.0  ;;  %v803_v43 = vmul.f32 %v795_v51, %v795_v51 }
 0x3ad   :  { %v478_v11 = vmax.f32 %v472_v55, 0.0  ;;  %v980_v15 = vmax.f32 %v974_v56, 0.0  ;;  %v813_v55 = vsel %vm263_vm9, %v804_v52, 0.0 }
 0x3ae   :  { %v799_v12 = vsub.f32 %v1709_v41, %v1774_v31  ;;  %v800_v40 = vsub.f32 %v1696_v34, %v1774_v31  ;;  %v818_v0 = vadd.f32 %v817_v13, %v805_v42  ;;  %v814_v2 = vadd.f32 %v813_v55, %v803_v43 }
 0x3af   :  { %v486_v20 = vmul.f32 %v1740_v8, %v478_v11  ;;  %v984_v36 = vmul.f32 %v1740_v8, %v980_v15  ;;  %v1264_v15 = vld [vmem:[%s2221_s1 + $0x7] ss:$0 sm:$0xff]  ;;  %s1422_s1 = smov [#allocation2]  }
 0x3b0   :  { %989 = vadd.xlane.f32.xlu0 %v983_v19  ;;  %v807_v56 = vmul.f32 %v799_v12, %v799_v12  ;;  %v808_v61 = vmul.f32 %v800_v40, %v800_v40  ;;  %s1245_s28 = sshll.u32 %s1422_s1, 4  ;;  %s1246_s28 = int_to_ptr.vmem [resolvable:$true] %s1245_s28 }
 0x3b1   :  { %v493_v35 = vsel %vm276_vm8, %v486_v20, 0.0  ;;  %v991_v8 = vsel %vm276_vm8, %v984_v36, 0.0  ;;  %s1396_s29 = scalar_lea.vmem %s1246_s28, 16  ;;  %s1400_s30 = scalar_lea.vmem %s1246_s28, 32 }
 0x3b2   :  { %494 = vadd.xlane.f32.xlu1 %v493_v35  ;;  %v821_v4 = vsel %vm276_vm8, %v807_v56, 0.0  ;;  %v822_v6 = vsel %vm278_vm10, %v808_v61, 0.0  ;;  %p1397_p0 = scmp.ne.s32.totalorder %s1246_s28, %s1396_s29  ;;  %p1401_p1 = scmp.lt.s32.totalorder %s1246_s28, %s1246_s28 }
 0x3b3   :  { %v823_v7 = vadd.f32 %v822_v6, %v821_v4  ;;  %p1402_p2 = scmp.lt.s32.totalorder %s1400_s30, %s1396_s29 }
 0x3b4   :  { %313 = vadd.xlane.f32.xlu0 %v312_v38 }
 0x3b5   :  { %p1403_p3 = por %p1402_p2, %p1401_p1 }
 0x3b6   :  { %992 = vadd.xlane.f32.xlu1 %v991_v8 }
 0x3b7   :  { %p1404_p4 = pnand %p1403_p3, %p1397_p0 }
 0x3b8   :  { %811 = vadd.xlane.f32.xlu0 %v810_v53 }
 0x3ba   :  { %318 = vadd.xlane.f32.xlu1 %v317_v54 }
 0x3bc   :  { %819 = vadd.xlane.f32.xlu0 %v818_v0 }
 0x3be   :  { %815 = vadd.xlane.f32.xlu1 %v814_v2 }
 0x3c2   :  { %824 = vadd.xlane.f32.xlu1 %v823_v7 }
 0x3fb   :  { %v1796_v11 = vpop.xlane.xlu0 %305 }
 0x3fc   :  { %v1804_v20 = vmul.f32 0.0067114094, %v1796_v11 }
 0x3fd   :  { %v1801_v62 = vpop.xlane.xlu1 %309 }
 0x3fe   :  { %v1807_v22 = vmul.f32 0.0067114094, %v1801_v62  ;;  %vm326_vm11 = vcmp.eq.f32.partialorder %v1804_v20, inf  ;;  %vm328_vm12 = vcmp.eq.f32.partialorder %v1804_v20, 0.0 }
 0x400   :  { %vm333_vm13 = vcmp.eq.f32.partialorder %v1807_v22, inf  ;;  %vm335_vm14 = vcmp.eq.f32.partialorder %v1807_v22, 0.0 }
 0x42d   :  { %v488_v18 = vpop.xlane.xlu0 %487 }
 0x42e   :  { %v500_v19 = vadd.f32 %v1264_v15, %v488_v18 }
 0x430   :  { %v1265_v21 = vmul.f32 -1.442695, %v500_v19 }
 0x431   :  { %v986_v23 = vpop.xlane.xlu0 %985  ;;  %v490_v24 = vpop.xlane.xlu1 %489 }
 0x432   :  { %1316 = vpow2.f32 %v1265_v21  ;;  %v994_v25 = vadd.f32 %v1264_v15, %v986_v23  ;;  %v501_v27 = vadd.f32 %v1264_v15, %v490_v24 }
 0x433   :  { %1318 = vrsqrt.f32 %v1804_v20 }
 0x434   :  { %v1278_v35 = vmul.f32 -1.442695, %v994_v25  ;;  %v1266_v36 = vmul.f32 -1.442695, %v501_v27  ;;  %1320 = vrsqrt.f32 %v1807_v22 }
 0x435   :  { %v988_v37 = vpop.xlane.xlu1 %987  ;;  %v492_v38 = vpop.xlane.xlu0 %491 }
 0x436   :  { %1322 = vpow2.f32 %v1278_v35  ;;  %v995_v44 = vadd.f32 %v1264_v15, %v988_v37  ;;  %v502_v45 = vadd.f32 %v1264_v15, %v492_v38  ;;  %v329_v38 = vand.u32 2147483648, %v1804_v20 }
 0x437   :  { %1324 = vpow2.f32 %v1266_v36 }
 0x438   :  { %v1279_v32 = vmul.f32 -1.442695, %v995_v44  ;;  %v1267_v51 = vmul.f32 -1.442695, %v502_v45 }
 0x439   :  { %v990_v46 = vpop.xlane.xlu0 %989 }
 0x43a   :  { %1326 = vpow2.f32 %v1279_v32  ;;  %v996_v48 = vadd.f32 %v1264_v15, %v990_v46 }
 0x43b   :  { %v495_v49 = vpop.xlane.xlu1 %494  ;;  %1328 = vpow2.f32 %v1267_v51 }
 0x43c   :  { %v503_v8 = vadd.f32 %v1264_v15, %v495_v49  ;;  %v1280_v52 = vmul.f32 -1.442695, %v996_v48  ;;  %v336_v48 = vand.u32 2147483648, %v1807_v22 }
 0x43d   :  { %v1811_v12 = vpop.xlane.xlu0 %313 }
 0x43e   :  { %v1268_v53 = vmul.f32 -1.442695, %v503_v8  ;;  %1330 = vpow2.f32 %v1280_v52  ;;  %v1822_v19 = vmul.f32 0.0067114094, %v1811_v12 }
 0x43f   :  { %v1317_v40 = vpop.eup %1316  ;;  %v993_v42 = vpop.xlane.xlu1 %992 }
 0x440   :  { %v1319_v54 = vpop.eup %1318  ;;  %v516_v13 = vadd.f32 1.0, %v1317_v40  ;;  %v997_v43 = vadd.f32 %v1264_v15, %v993_v42  ;;  %vm340_vm0 = vcmp.eq.f32.partialorder %v1822_v19, inf  ;;  %vm342_vm2 = vcmp.eq.f32.partialorder %v1822_v19, 0.0 }
 0x441   :  { %v1321_v55 = vpop.eup %1320  ;;  %v1813_v61 = vpop.xlane.xlu0 %811  ;;  %v325_v6 = vmul.f32 %v1319_v54, %v1804_v20 }
 0x442   :  { %1332 = vrcp.f32 %v516_v13  ;;  %v1281_v56 = vmul.f32 -1.442695, %v997_v43  ;;  %v1816_v2 = vmul.f32 0.0067114094, %v1813_v61  ;;  %v332_v21 = vmul.f32 %v1321_v55, %v1807_v22 }
 0x443   :  { %v1323_v0 = vpop.eup %1322  ;;  %1334 = vpow2.f32 %v1268_v53  ;;  %v1818_v4 = vpop.xlane.xlu1 %318  ;;  %v327_v35 = vsel %vm326_vm11, %v1804_v20, %v325_v6 }
 0x444   :  { %v1325_v7 = vpop.eup %1324  ;;  %v1010_v18 = vadd.f32 1.0, %v1323_v0  ;;  %1336 = vpow2.f32 %v1281_v56  ;;  %v1828_v24 = vmul.f32 0.0067114094, %v1818_v4  ;;  %v1845_v45 = vsel %vm328_vm12, %v329_v38, %v327_v35 }
 0x445   :  { %v517_v15 = vadd.f32 1.0, %v1325_v7  ;;  %1338 = vrsqrt.f32 %v1816_v2  ;;  %v1830_v25 = vpop.xlane.xlu0 %819  ;;  %v334_v32 = vsel %vm333_vm13, %v1807_v22, %v332_v21  ;;  %v648_v51 = vadd.f32 1e-08, %v1845_v45 }
 0x446   :  { %1340 = vrcp.f32 %v1010_v18  ;;  %v1843_v44 = vmul.f32 0.0067114094, %v1830_v25  ;;  %v1858_v8 = vsel %vm335_vm14, %v336_v48, %v334_v32  ;;  %vm832_vm15 = vcmp.eq.f32.partialorder %v1816_v2, inf }
 0x447   :  { %v1327_v23 = vpop.eup %1326  ;;  %1342 = vrcp.f32 %v517_v15  ;;  %v1832_v27 = vpop.xlane.xlu1 %815  ;;  %v649_v54 = vadd.f32 1e-08, %v1858_v8  ;;  %v652_v13 = vmul.f32 %v648_v51, %v648_v51  ;;  %vm834_vm1 = vcmp.eq.f32.partialorder %v1816_v2, 0.0 }
 0x448   :  { %v1011_v36 = vadd.f32 1.0, %v1327_v23  ;;  %1344 = vrsqrt.f32 %v1822_v19  ;;  %v1837_v37 = vmul.f32 0.0067114094, %v1832_v27  ;;  %v1329_v49 = vpop.eup %1328  ;;  %vm347_vm5 = vcmp.eq.f32.partialorder %v1828_v24, inf }
 0x449   :  { %v518_v55 = vadd.f32 1.0, %v1329_v49  ;;  %v653_v15 = vmul.f32 %v649_v54, %v649_v54  ;;  %vm349_vm6 = vcmp.eq.f32.partialorder %v1828_v24, 0.0  ;;  %vm846_vm7 = vcmp.eq.f32.partialorder %v1843_v44, inf }
 0x44a   :  { %1346 = vrcp.f32 %v1011_v36  ;;  %vm839_vm3 = vcmp.eq.f32.partialorder %v1837_v37, inf  ;;  %vm841_vm4 = vcmp.eq.f32.partialorder %v1837_v37, 0.0  ;;  %vm848_vm8 = vcmp.eq.f32.partialorder %v1843_v44, 0.0 }
 0x44b   :  { %1348 = vrsqrt.f32 %v1828_v24  ;;  %v1849_v46 = vpop.xlane.xlu1 %824  ;;  %v1331_v52 = vpop.eup %1330  ;;  %vm724_vm13 = vcmask 7168   ;;  %vm730_vm14 = vcmask 5120  }
 0x44c   :  { %1350 = vrsqrt.f32 %v1837_v37  ;;  %v1854_v20 = vmul.f32 0.0067114094, %v1849_v46  ;;  %v1012_v23 = vadd.f32 1.0, %v1331_v52  ;;  %v835_v52 = vand.u32 2147483648, %v1816_v2 }
 0x44d   :  { %1352 = vrsqrt.f32 %v1843_v44 }
 0x44e   :  { %1354 = vrsqrt.f32 %v1854_v20  ;;  %vm853_vm11 = vcmp.eq.f32.partialorder %v1854_v20, inf  ;;  %vm855_vm12 = vcmp.eq.f32.partialorder %v1854_v20, 0.0 }
 0x44f   :  { %v1861_v40 = vpop.eup %1332  ;;  %1356 = vrcp.f32 %v652_v13 }
 0x450   :  { %v1335_v53 = vpop.eup %1334  ;;  %538 = vperm.xlu0 %1308, %v1861_v40   ;;  %v528_v42 = vsub.f32 1.0, %v1861_v40  ;;  %1358 = vrcp.f32 %v518_v55 }
 0x451   :  { %v1337_v22 = vpop.eup %1336  ;;  %v519_v6 = vadd.f32 1.0, %v1335_v53 }
 0x452   :  { %v1339_v43 = vpop.eup %1338  ;;  %v1868_v56 = vmul.f32 %v528_v42, %v1845_v45  ;;  %v1013_v36 = vadd.f32 1.0, %v1337_v22  ;;  %v564_v54 = vmul.f32 %v528_v42, %v1720_v50 }
 0x453   :  { %v1870_v0 = vpop.eup %1340  ;;  %v831_v7 = vmul.f32 %v1339_v43, %v1816_v2  ;;  %1360 = vrcp.f32 %v519_v6 }
 0x454   :  { %v1873_v18 = vpop.eup %1342  ;;  %1032 = vperm.xlu1 %1312, %v1870_v0   ;;  %v676_v35 = vadd.f32 1e-08, %v1868_v56  ;;  %1362 = vrcp.f32 %v653_v15  ;;  %v842_v15 = vand.u32 2147483648, %v1837_v37 }
 0x455   :  { %v1345_v21 = vpop.eup %1344  ;;  %v529_v38 = vsub.f32 1.0, %v1873_v18  ;;  %v833_v48 = vsel %vm832_vm15, %v1816_v2, %v831_v7  ;;  %1364 = vrcp.f32 %v1012_v23  ;;  %vm1235_vm15 = vcmask 0  }
 0x456   :  { %v339_v51 = vmul.f32 %v1345_v21, %v1822_v19  ;;  %v680_v22 = vmul.f32 %v676_v35, %v676_v35  ;;  %1366 = vrcp.f32 %v1013_v36  ;;  %v1889_v13 = vsel %vm834_vm1, %v835_v52, %v833_v48 }
 0x457   :  { %v1879_v32 = vpop.eup %1346  ;;  %v565_v55 = vmul.f32 %v529_v38, %v1722_v39  ;;  %v1903_v39 = vmul.f32 %v529_v38, %v1858_v8  ;;  %v1144_v21 = vadd.f32 1e-08, %v1889_v13  ;;  %v1022_v35 = vsub.f32 1.0, %v1870_v0 }
 0x458   :  { %v1349_v49 = vpop.eup %1348  ;;  %543 = vperm.xlu1 %1312, %v1873_v18   ;;  %1037 = vperm.xlu0 %1308, %v1879_v32   ;;  %v341_v50 = vsel %vm340_vm0, %v1822_v19, %v339_v51  ;;  %1368 = vrcp.f32 %v680_v22  ;;  %v343_v36 = vand.u32 2147483648, %v1822_v19  ;;  %v350_v38 = vand.u32 2147483648, %v1828_v24 }
 0x459   :  { %v1351_v53 = vpop.eup %1350  ;;  %v346_v7 = vmul.f32 %v1349_v49, %v1828_v24  ;;  %v849_v22 = vand.u32 2147483648, %v1843_v44 }
 0x45a   :  { %v838_v43 = vmul.f32 %v1351_v53, %v1837_v37  ;;  %v1353_v6 = vpop.eup %1352  ;;  %v1919_v51 = vsel %vm342_vm2, %v343_v36, %v341_v50  ;;  %v677_v53 = vadd.f32 1e-08, %v1903_v39  ;;  %v1058_v50 = vmul.f32 %v1022_v35, %v1745_v33 }
 0x45b   :  { %v1355_v42 = vpop.eup %1354  ;;  %v348_v48 = vsel %vm347_vm5, %v1828_v24, %v346_v7 }
 0x45c   :  { %v840_v2 = vsel %vm839_vm3, %v1837_v37, %v838_v43  ;;  %570 = vperm.xlu1 %1312, %v564_v54   ;;  %575 = vperm.xlu0 %1308, %v565_v55   ;;  %v845_v37 = vmul.f32 %v1353_v6, %v1843_v44  ;;  %v852_v52 = vmul.f32 %v1355_v42, %v1854_v20  ;;  %v1023_v43 = vsub.f32 1.0, %v1879_v32  ;;  %v1931_v19 = vpop.eup %1356 }
 0x45d   :  { %v1906_v23 = vsel %vm841_vm4, %v842_v15, %v840_v2  ;;  %v1148_v54 = vmul.f32 %v1144_v21, %v1144_v21  ;;  %v1929_v55 = vmul.f32 %v1022_v35, %v1889_v13  ;;  %v1935_v6 = vsel %vm349_vm6, %v350_v38, %v348_v48  ;;  %v1939_v2 = vpop.eup %1358 }
 0x45e   :  { %v1145_v49 = vadd.f32 1e-08, %v1906_v23  ;;  %v847_v7 = vsel %vm846_vm7, %v1843_v44, %v845_v37  ;;  %v681_v15 = vmul.f32 %v677_v53, %v677_v53  ;;  %v650_v42 = vadd.f32 1e-08, %v1919_v51 }
 0x45f   :  { %v1059_v36 = vmul.f32 %v1023_v43, %v1765_v10  ;;  %v854_v24 = vsel %vm853_vm11, %v1854_v20, %v852_v52  ;;  %v1172_v37 = vadd.f32 1e-08, %v1929_v55  ;;  %v1950_v33 = vmul.f32 %v1023_v43, %v1906_v23 }
 0x460   :  { %606 = vperm.xlu1 %1312, %v1868_v56   ;;  %611 = vperm.xlu0 %1308, %v1903_v39   ;;  %v1149_v21 = vmul.f32 %v1145_v49, %v1145_v49  ;;  %v1944_v34 = vpop.eup %1360  ;;  %v651_v48 = vadd.f32 1e-08, %v1935_v6  ;;  %v1957_v38 = vsel %vm848_vm8, %v849_v22, %v847_v7  ;;  %v856_v10 = vand.u32 2147483648, %v1854_v20 }
 0x461   :  { %v1952_v35 = vpop.eup %1362  ;;  %1370 = vrcp.f32 %v681_v15  ;;  %v1176_v52 = vmul.f32 %v1172_v37, %v1172_v37  ;;  %v1173_v53 = vadd.f32 1e-08, %v1950_v33  ;;  %v530_v43 = vsub.f32 1.0, %v1939_v2 }
 0x462   :  { %v1960_v49 = vpop.eup %1364  ;;  %1372 = vrcp.f32 %v1148_v54  ;;  %v654_v41 = vmul.f32 %v650_v42, %v650_v42  ;;  %v1968_v44 = vsel %vm855_vm12, %v856_v10, %v854_v24  ;;  %v531_v22 = vsub.f32 1.0, %v1944_v34 }
 0x463   :  { %1374 = vrcp.f32 %v1149_v21  ;;  %v1146_v7 = vadd.f32 1e-08, %v1957_v38  ;;  %v1177_v54 = vmul.f32 %v1173_v53, %v1173_v53  ;;  %v1974_v15 = vmul.f32 %v530_v43, %v1919_v51 }
 0x464   :  { %1064 = vperm.xlu1 %1312, %v1058_v50   ;;  %1069 = vperm.xlu0 %1308, %v1059_v36   ;;  %v1964_v50 = vpop.eup %1366  ;;  %1376 = vrcp.f32 %v1176_v52  ;;  %v655_v36 = vmul.f32 %v651_v48, %v651_v48  ;;  %v1978_v42 = vmul.f32 %v531_v22, %v1935_v6  ;;  %v1147_v24 = vadd.f32 1e-08, %v1968_v44 }
 0x465   :  { %v1369_v21 = vpop.eup %1368  ;;  %1378 = vrcp.f32 %v1177_v54  ;;  %v678_v37 = vadd.f32 1e-08, %v1974_v15  ;;  %v664_v52 = vmul.f32 %v1868_v56, %v1868_v56  ;;  %v672_v48 = vmul.f32 %v1845_v45, %v1845_v45 }
 0x466   :  { %v704_v53 = vmul.f32 %v1861_v40, %v1861_v40  ;;  %v679_v17 = vadd.f32 1e-08, %v1978_v42  ;;  %1380 = vrcp.f32 %v654_v41  ;;  %v1150_v20 = vmul.f32 %v1146_v7, %v1146_v7 }
 0x467   :  { %v673_v54 = vmul.f32 %v1858_v8, %v1858_v8  ;;  %v682_v28 = vmul.f32 %v678_v37, %v678_v37  ;;  %1382 = vrcp.f32 %v655_v36  ;;  %v685_v10 = vmul.f32 %v1369_v21, %v672_v48 }
 0x468   :  { %1101 = vperm.xlu1 %1312, %v1929_v55   ;;  %1106 = vperm.xlu0 %1308, %v1950_v33   ;;  %v683_v56 = vmul.f32 %v679_v17, %v679_v17  ;;  %v2237_v45 = vsub.f32 1.0, %v1960_v49  ;;  %v1151_v40 = vmul.f32 %v1147_v24, %v1147_v24  ;;  %v665_v41 = vmul.f32 %v1903_v39, %v1903_v39 }
 0x469   :  { %1384 = vrcp.f32 %v682_v28  ;;  %v2238_v8 = vsub.f32 1.0, %v1964_v50  ;;  %v668_v36 = vmul.f32 %v1931_v19, %v664_v52  ;;  %v708_v21 = vmul.f32 %v704_v53, %v1796_v11 }
 0x46a   :  { %v1998_v30 = vmul.f32 %v2237_v45, %v1957_v38  ;;  %1386 = vrcp.f32 %v683_v56  ;;  %v1200_v37 = vmul.f32 %v1870_v0, %v1870_v0  ;;  %v1201_v39 = vmul.f32 %v1879_v32, %v1879_v32 }
 0x46b   :  { %v2005_v7 = vmul.f32 %v2238_v8, %v1968_v44  ;;  %1388 = vrcp.f32 %v1150_v20  ;;  %v2017_v28 = vmul.f32 %v1919_v51, %v1919_v51  ;;  %v692_v24 = vadd.f32 %v685_v10, %v668_v36 }
 0x46c   :  { %548 = vperm.xlu1 %1312, %v1939_v2   ;;  %553 = vperm.xlu0 %1308, %v1944_v34   ;;  %v1174_v17 = vadd.f32 1e-08, %v1998_v30  ;;  %v705_v11 = vmul.f32 %v1873_v18, %v1873_v18  ;;  %v706_v20 = vmul.f32 %v1939_v2, %v1939_v2  ;;  %1390 = vrcp.f32 %v1151_v40 }
 0x46d   :  { %v1175_v48 = vadd.f32 1e-08, %v2005_v7  ;;  %v669_v32 = vmul.f32 %v1952_v35, %v665_v41  ;;  %v566_v53 = vmul.f32 %v530_v43, %v1743_v26  ;;  %v567_v56 = vmul.f32 %v531_v22, %v1749_v47 }
 0x46e   :  { %v1178_v52 = vmul.f32 %v1174_v17, %v1174_v17  ;;  %v1371_v0 = vpop.eup %1370  ;;  %v707_v8 = vmul.f32 %v1944_v34, %v1944_v34  ;;  %v2033_v36 = vmul.f32 %v1931_v19, %v708_v21  ;;  %v1160_v2 = vmul.f32 %v1929_v55, %v1929_v55 }
 0x46f   :  { %v2027_v51 = vpop.eup %1372  ;;  %v687_v10 = vmul.f32 %v1371_v0, %v673_v54  ;;  %v1179_v18 = vmul.f32 %v1175_v48, %v1175_v48  ;;  %v1168_v26 = vmul.f32 %v1889_v13, %v1889_v13  ;;  %v1269_v54 = vadd.f32 -1.0, %v692_v24 }
 0x470   :  { %1042 = vperm.xlu1 %1312, %v1960_v49   ;;  %1047 = vperm.xlu0 %1308, %v1964_v50   ;;  %1392 = vrcp.f32 %v1178_v52  ;;  %v1375_v45 = vpop.eup %1374  ;;  %v709_v47 = vmul.f32 %v705_v11, %v1801_v62  ;;  %v1164_v22 = vmul.f32 %v2027_v51, %v1160_v2  ;;  %v1169_v19 = vmul.f32 %v1906_v23, %v1906_v23 }
 0x471   :  { %v1377_v43 = vpop.eup %1376  ;;  %v693_v40 = vadd.f32 %v687_v10, %v669_v32  ;;  %1394 = vrcp.f32 %v1179_v18  ;;  %v1161_v55 = vmul.f32 %v1950_v33, %v1950_v33  ;;  %v2046_v13 = vmul.f32 %v706_v20, %v1811_v12 }
 0x472   :  { %v1181_v34 = vmul.f32 %v1377_v43, %v1168_v26  ;;  %v1379_v41 = vpop.eup %1378  ;;  %v1204_v21 = vmul.f32 %v1200_v37, %v1813_v61  ;;  %v1205_v17 = vmul.f32 %v1201_v39, %v1832_v27  ;;  %v2052_v24 = vmul.f32 %v1960_v49, %v1960_v49 }
 0x473   :  { %v1270_v62 = vadd.f32 -1.0, %v693_v40  ;;  %v1165_v52 = vmul.f32 %v1375_v45, %v1161_v55  ;;  %v1183_v48 = vmul.f32 %v1379_v41, %v1169_v19  ;;  %v1381_v23 = vpop.eup %1380  ;;  %v711_v33 = vmul.f32 %v707_v8, %v1818_v4 }
 0x474   :  { %580 = vperm.xlu1 %1312, %v566_v53   ;;  %585 = vperm.xlu0 %1308, %v567_v56   ;;  %v1188_v11 = vadd.f32 %v1181_v34, %v1164_v22  ;;  %v700_v0 = vmul.f32 0.5, %v1269_v54  ;;  %v713_v20 = vmul.f32 %v1952_v35, %v709_v47  ;;  %v1383_v61 = vpop.eup %1382  ;;  %v666_v39 = vmul.f32 %v1974_v15, %v1974_v15 }
 0x475   :  { %v701_v12 = vmul.f32 0.5, %v1270_v62  ;;  %v1189_v37 = vadd.f32 %v1183_v48, %v1165_v52  ;;  %v2239_v32 = vsub.f32 1.0, %v1960_v49  ;;  %v667_v4 = vmul.f32 %v1978_v42, %v1978_v42 }
 0x476   :  { %v1298_v27 = vadd.f32 -1.0, %v1188_v11  ;;  %v1385_v10 = vpop.eup %1384  ;;  %v675_v35 = vmul.f32 %v1935_v6, %v1935_v6  ;;  %v2240_v18 = vsub.f32 1.0, %v1964_v50  ;;  %v1203_v49 = vmul.f32 %v1964_v50, %v1964_v50 }
 0x477   :  { %v1060_v53 = vmul.f32 %v2239_v32, %v1759_v63  ;;  %v717_v56 = vmul.f32 150.0, %v701_v12  ;;  %v1387_v2 = vpop.eup %1386  ;;  %v1299_v43 = vadd.f32 -1.0, %v1189_v37  ;;  %v689_v54 = vmul.f32 %v1385_v10, %v2017_v28 }
 0x478   :  { %616 = vperm.xlu1 %1312, %v1974_v15   ;;  %621 = vperm.xlu0 %1308, %v1978_v42   ;;  %v1061_v8 = vmul.f32 %v2240_v18, %v1774_v31  ;;  %v1196_v26 = vmul.f32 0.5, %v1298_v27  ;;  %v670_v15 = vmul.f32 %v1381_v23, %v666_v39  ;;  %v1389_v63 = vpop.eup %1388  ;;  %v716_v40 = vmul.f32 150.0, %v700_v0 }
 0x479   :  { %v671_v42 = vmul.f32 %v1383_v61, %v667_v4  ;;  %v691_v47 = vmul.f32 %v1387_v2, %v675_v35  ;;  %v721_v6 = vadd.f32 %v717_v56, %v713_v20  ;;  %v1197_v22 = vmul.f32 0.5, %v1299_v43  ;;  %v1391_v19 = vpop.eup %1390 }
 0x47a   :  { %v694_v34 = vadd.f32 %v689_v54, %v670_v15  ;;  %v1170_v31 = vmul.f32 %v1957_v38, %v1957_v38  ;;  %v1209_v55 = vmul.f32 %v1375_v45, %v1205_v17  ;;  %v1162_v28 = vmul.f32 %v1998_v30, %v1998_v30 }
 0x47b   :  { %v695_v41 = vadd.f32 %v691_v47, %v671_v42  ;;  %v1171_v62 = vmul.f32 %v1968_v44, %v1968_v44  ;;  %v1212_v11 = vmul.f32 150.0, %v1196_v26  ;;  %v1213_v52 = vmul.f32 150.0, %v1197_v22 }
 0x47c   :  { %1074 = vperm.xlu1 %1312, %v1060_v53   ;;  %1079 = vperm.xlu0 %1308, %v1061_v8   ;;  %v1271_v48 = vadd.f32 -1.0, %v694_v34  ;;  %v1163_v0 = vmul.f32 %v2005_v7, %v2005_v7  ;;  %v720_v38 = vadd.f32 %v716_v40, %v2033_v36  ;;  %v1166_v45 = vmul.f32 %v1389_v63, %v1162_v28 }
 0x47d   :  { %v1393_v50 = vpop.eup %1392  ;;  %v1272_v12 = vadd.f32 -1.0, %v695_v41  ;;  %v1208_v27 = vmul.f32 %v2027_v51, %v1204_v21  ;;  %v726_v39 = vsel %vm724_vm13, %v721_v6, 0.0  ;;  %v1217_v32 = vadd.f32 %v1213_v52, %v1209_v55 }
 0x47e   :  { %v1185_v17 = vmul.f32 %v1393_v50, %v1170_v31  ;;  %v1395_v20 = vpop.eup %1394  ;;  %v702_v44 = vmul.f32 0.5, %v1271_v48  ;;  %v1167_v37 = vmul.f32 %v1391_v19, %v1163_v0  ;;  %v714_v56 = vmul.f32 %v1381_v23, %v2046_v13 }
 0x47f   :  { %v703_v53 = vmul.f32 0.5, %v1272_v12  ;;  %v1187_v10 = vmul.f32 %v1395_v20, %v1171_v62  ;;  %v715_v4 = vmul.f32 %v1383_v61, %v711_v33  ;;  %v1216_v36 = vadd.f32 %v1212_v11, %v1208_v27 }
 0x480   :  { %1111 = vperm.xlu1 %1312, %v1998_v30   ;;  %1116 = vperm.xlu0 %1308, %v2005_v7   ;;  %v1190_v30 = vadd.f32 %v1185_v17, %v1166_v45  ;;  %v718_v35 = vmul.f32 150.0, %v702_v44  ;;  %v725_v7 = vsel %vm724_vm13, %v720_v38, 0.0  ;;  %v1206_v51 = vmul.f32 %v2052_v24, %v1830_v25 }
 0x481   :  { %v719_v18 = vmul.f32 150.0, %v703_v53  ;;  %v1191_v2 = vadd.f32 %v1187_v10, %v1167_v37  ;;  %v727_v26 = vadd.f32 %v726_v39, %v725_v7  ;;  %v1221_v40 = vsel %vm724_vm13, %v1217_v32, 0.0 }
 0x482   :  { %v1300_v8 = vadd.f32 -1.0, %v1190_v30  ;;  %v722_v21 = vadd.f32 %v718_v35, %v714_v56  ;;  %v1210_v13 = vmul.f32 %v1389_v63, %v1206_v51  ;;  %v1207_v23 = vmul.f32 %v1203_v49, %v1849_v46 }
 0x483   :  { %v1301_v15 = vadd.f32 -1.0, %v1191_v2  ;;  %v723_v54 = vadd.f32 %v719_v18, %v715_v4  ;;  %v1220_v61 = vsel %vm724_vm13, %v1216_v36, 0.0 }
 0x484   :  { %v1198_v43 = vmul.f32 0.5, %v1300_v8  ;;  %v728_v33 = vsel %vm724_vm13, %v722_v21, 0.0  ;;  %v1222_v24 = vadd.f32 %v1221_v40, %v1220_v61  ;;  %v1211_v22 = vmul.f32 %v1391_v19, %v1207_v23 }
 0x485   :  { %v1199_v47 = vmul.f32 0.5, %v1301_v15  ;;  %v729_v6 = vadd.f32 %v728_v33, %v727_v26  ;;  %v731_v25 = vsel %vm730_vm14, %v723_v54, 0.0 }
 0x486   :  { %v1214_v42 = vmul.f32 150.0, %v1198_v43 }
 0x487   :  { %v1215_v31 = vmul.f32 150.0, %v1199_v47  ;;  %v732_v55 = vadd.f32 %v731_v25, %v729_v6 }
 0x488   :  { %v1218_v34 = vadd.f32 %v1214_v42, %v1210_v13 }
 0x489   :  { %v733_v41 = vrot.slane %v732_v55, 4  ;;  %v1219_v28 = vadd.f32 %v1215_v31, %v1211_v22 }
 0x48a   :  { %v1223_v63 = vsel %vm724_vm13, %v1218_v34, 0.0 }
 0x48b   :  { %v1224_v62 = vadd.f32 %v1223_v63, %v1222_v24  ;;  %v734_v46 = vadd.f32 %v733_v41, %v732_v55  ;;  %v1225_v49 = vsel %vm730_vm14, %v1219_v28, 0.0 }
 0x48d   :  { %v1226_v50 = vadd.f32 %v1225_v49, %v1224_v62  ;;  %v735_v11 = vrot.slane %v734_v46, 2 }
 0x48f   :  { %v1227_v52 = vrot.slane %v1226_v50, 4  ;;  %v736_v48 = vadd.f32 %v735_v11, %v734_v46 }
 0x491   :  { %v1228_v0 = vadd.f32 %v1227_v52, %v1226_v50  ;;  %v737_v12 = vrot.slane %v736_v48, 1 }
 0x493   :  { %v1229_v38 = vrot.slane %v1228_v0, 2  ;;  %v738_v17 = vadd.f32 %v737_v12, %v736_v48 }
 0x495   :  { %v1230_v45 = vadd.f32 %v1229_v38, %v1228_v0 }
 0x497   :  { %v1231_v19 = vrot.slane %v1230_v45, 1 }
 0x499   :  { %v1232_v20 = vadd.f32 %v1231_v19, %v1230_v45 }
 0x49b   :  { %v1233_v27 = vadd.f32 %v1232_v20, %v738_v17 }
 0x49d   :  { %v1234_v44 = vmul.f32 0.00011111111, %v1233_v27 }
 0x49f   :  { %1236 = vst.msk [vmem:[#allocation2] sm:$0x1] %vm1235_vm15, %v1234_v44 }
 0x4a0   :  { %1407 = shalt.err (!%p1404_p4)
}
 0x4a1   :  { %1248 = dma.vmem_to_hbm [thread:$0]  %s1246_s28, 16, %s2226_s6, [#allocation3]   ;;  %v598_v56 = vld [vmem:[%s2224_s4 + $0x10] sm:$0xff]  ;;  %v599_v8 = vld [vmem:[%s2224_s4 + $0x18] sm:$0xff]  ;;  %v596_v2 = vld [vmem:[%s2224_s4] sm:$0xff] }
 0x4a2   :  { %v597_v7 = vld [vmem:[%s2224_s4 + $0x8] sm:$0xff]  ;;  %v1282_v47 = vld [vmem:[%s2224_s4 + $0x40] sm:$0xff]  ;;  %v1284_v22 = vld [vmem:[%s2224_s4 + $0x50] sm:$0xff] }
 0x4a3   :  { %v1283_v6 = vld [vmem:[%s2224_s4 + $0x48] sm:$0xff]  ;;  %v1285_v34 = vld [vmem:[%s2224_s4 + $0x58] sm:$0xff]  ;;  %v600_v20 = vld [vmem:[%s2224_s4 + $0x20] sm:$0xff] }
 0x4a4   :  { %v601_v27 = vld [vmem:[%s2224_s4 + $0x28] sm:$0xff] }
 0x4cb   :  { %v539_v37 = vpop.permute.xlu0 %538 }
 0x4cc   :  { %v556_v4 = vmul.f32 %v539_v37, %v1642_v59  ;;  %v557_v36 = vmul.f32 %v539_v37, %v1638_v57 }
 0x4cf   :  { %v1033_v39 = vpop.permute.xlu1 %1032 }
 0x4d0   :  { %v1050_v25 = vmul.f32 %v1033_v39, %v1650_v1  ;;  %v1051_v24 = vmul.f32 %v1033_v39, %v1640_v58  ;;  %v602_v39 = vld [vmem:[%s2224_s4 + $0x30] sm:$0x3f] }
 0x4d3   :  { %v1038_v32 = vpop.permute.xlu0 %1037  ;;  %v544_v53 = vpop.permute.xlu1 %543 }
 0x4d4   :  { %v558_v35 = vmul.f32 %v544_v53, %v1644_v60  ;;  %v559_v18 = vmul.f32 %v544_v53, %v1652_v3  ;;  %v1052_v31 = vmul.f32 %v1038_v32, %v1672_v16  ;;  %v1053_v55 = vmul.f32 %v1038_v32, %v1657_v5  ;;  %v603_v32 = vld [vmem:[%s2224_s4 + $0x38] sm:$0x3f] }
 0x4d7   :  { %v576_v30 = vpop.permute.xlu0 %575  ;;  %v571_v10 = vpop.permute.xlu1 %570 }
 0x4d8   :  { %v590_v51 = vadd.f32 %v576_v30, %v558_v35  ;;  %v591_v59 = vadd.f32 %v576_v30, %v559_v18  ;;  %v588_v21 = vadd.f32 %v571_v10, %v556_v4  ;;  %v589_v57 = vadd.f32 %v571_v10, %v557_v36  ;;  %v2241_v30 = vld [vmem:[#allocation7_spill] sm:$0xff] }
 0x4db   :  { %v612_v26 = vpop.permute.xlu0 %611  ;;  %v607_v60 = vpop.permute.xlu1 %606 }
 0x4dc   :  { %v626_v43 = vmul.f32 %v612_v26, %v598_v56  ;;  %v627_v3 = vmul.f32 %v612_v26, %v599_v8  ;;  %v624_v15 = vmul.f32 %v607_v60, %v596_v2  ;;  %v625_v54 = vmul.f32 %v607_v60, %v597_v7  ;;  %v1286_v60 = vld [vmem:[%s2224_s4 + $0x60] sm:$0xff] }
 0x4de   :  { %v634_v40 = vadd.f32 %v626_v43, %v590_v51  ;;  %v635_v13 = vadd.f32 %v627_v3, %v591_v59  ;;  %v632_v23 = vadd.f32 %v624_v15, %v588_v21  ;;  %v633_v33 = vadd.f32 %v625_v54, %v589_v57  ;;  %v1287_v43 = vld [vmem:[%s2224_s4 + $0x68] sm:$0xff] }
 0x4df   :  { %v1065_v61 = vpop.permute.xlu1 %1064  ;;  %v1070_v42 = vpop.permute.xlu0 %1069  ;;  %v2242_v3 = vld [vmem:[#allocation6_spill] sm:$0xff]  ;;  %v2243_v54 = vld [vmem:[#allocation5_spill] sm:$0xff] }
 0x4e0   :  { %642 = vst [vmem:[%s2225_s5 + $0x10] sm:$0xff] %v634_v40  ;;  %643 = vst.msk [vmem:[%s2225_s5 + $0x18] sm:$0xff] %vm263_vm9, %v635_v13  ;;  %v1082_v28 = vadd.f32 %v1065_v61, %v1050_v25  ;;  %v1083_v63 = vadd.f32 %v1065_v61, %v1051_v24  ;;  %v1084_v49 = vadd.f32 %v1070_v42, %v1052_v31  ;;  %v1288_v13 = vld [vmem:[%s2224_s4 + $0x70] sm:$0x3f] }
 0x4e1   :  { %640 = vst [vmem:[%s2225_s5] sm:$0xff] %v632_v23  ;;  %641 = vst.msk [vmem:[%s2225_s5 + $0x8] sm:$0xff] %vm263_vm9, %v633_v33  ;;  %v1085_v58 = vadd.f32 %v1070_v42, %v1053_v55  ;;  %v1289_v23 = vld [vmem:[%s2224_s4 + $0x78] sm:$0x3f]  ;;  %v2244_v33 = vld [vmem:[#allocation9_spill] sm:$0xff] }
 0x4e2   :  { %v2245_v42 = vld [vmem:[#allocation8_spill] sm:$0xff] }
 0x4e3   :  { %v1102_v41 = vpop.permute.xlu1 %1101  ;;  %v1107_v62 = vpop.permute.xlu0 %1106 }
 0x4e4   :  { %v1119_v46 = vmul.f32 %v1282_v47, %v1102_v41  ;;  %v1120_v1 = vmul.f32 %v1283_v6, %v1102_v41  ;;  %v1121_v50 = vmul.f32 %v1284_v22, %v1107_v62  ;;  %v1122_v11 = vmul.f32 %v1285_v34, %v1107_v62 }
 0x4e6   :  { %v1127_v52 = vadd.f32 %v1119_v46, %v1082_v28  ;;  %v1128_v48 = vadd.f32 %v1120_v1, %v1083_v63  ;;  %v1129_v0 = vadd.f32 %v1121_v50, %v1084_v49  ;;  %v1130_v38 = vadd.f32 %v1122_v11, %v1085_v58 }
 0x4e7   :  { %v549_v12 = vpop.permute.xlu1 %548  ;;  %v554_v5 = vpop.permute.xlu0 %553 }
 0x4e8   :  { %1290 = vst [vmem:[%s2225_s5 + $0x40] sm:$0xff] %v1127_v52  ;;  %1291 = vst.msk [vmem:[%s2225_s5 + $0x48] sm:$0xff] %vm263_vm9, %v1128_v48  ;;  %v560_v44 = vmul.f32 %v549_v12, %v1665_v9  ;;  %v561_v37 = vmul.f32 %v549_v12, %v1670_v14  ;;  %v562_v53 = vmul.f32 %v554_v5, %v1690_v29 }
 0x4e9   :  { %1292 = vst [vmem:[%s2225_s5 + $0x50] sm:$0xff] %v1129_v0  ;;  %1293 = vst.msk [vmem:[%s2225_s5 + $0x58] sm:$0xff] %vm263_vm9, %v1130_v38  ;;  %v563_v10 = vmul.f32 %v554_v5, %v2241_v30 }
 0x4eb   :  { %v1043_v16 = vpop.permute.xlu1 %1042  ;;  %v1048_v45 = vpop.permute.xlu0 %1047 }
 0x4ec   :  { %v1054_v15 = vmul.f32 %v1043_v16, %v2242_v3  ;;  %v1055_v40 = vmul.f32 %v1043_v16, %v2243_v54  ;;  %v1056_v61 = vmul.f32 %v1048_v45, %v2244_v33  ;;  %v1057_v47 = vmul.f32 %v1048_v45, %v2245_v42 }
 0x4ef   :  { %v581_v19 = vpop.permute.xlu1 %580  ;;  %v586_v17 = vpop.permute.xlu0 %585 }
 0x4f0   :  { %v592_v4 = vadd.f32 %v581_v19, %v560_v44  ;;  %v593_v36 = vadd.f32 %v581_v19, %v561_v37  ;;  %v594_v8 = vadd.f32 %v586_v17, %v562_v53  ;;  %v595_v14 = vadd.f32 %v586_v17, %v563_v10 }
 0x4f3   :  { %v617_v56 = vpop.permute.xlu1 %616  ;;  %v622_v35 = vpop.permute.xlu0 %621 }
 0x4f4   :  { %v628_v18 = vmul.f32 %v617_v56, %v600_v20  ;;  %v629_v9 = vmul.f32 %v617_v56, %v601_v27  ;;  %v630_v2 = vmul.f32 %v622_v35, %v602_v39  ;;  %v631_v7 = vmul.f32 %v622_v35, %v603_v32 }
 0x4f6   :  { %v636_v51 = vadd.f32 %v628_v18, %v592_v4  ;;  %v637_v59 = vadd.f32 %v629_v9, %v593_v36  ;;  %v638_v21 = vadd.f32 %v630_v2, %v594_v8  ;;  %v639_v57 = vadd.f32 %v631_v7, %v595_v14 }
 0x4f7   :  { %v1075_v26 = vpop.permute.xlu1 %1074  ;;  %v1080_v29 = vpop.permute.xlu0 %1079 }
 0x4f8   :  { %644 = vst [vmem:[%s2225_s5 + $0x20] sm:$0xff] %v636_v51  ;;  %645 = vst.msk [vmem:[%s2225_s5 + $0x28] sm:$0xff] %vm263_vm9, %v637_v59  ;;  %v1086_v25 = vadd.f32 %v1075_v26, %v1054_v15  ;;  %v1087_v24 = vadd.f32 %v1075_v26, %v1055_v40  ;;  %v1088_v55 = vadd.f32 %v1080_v29, %v1056_v61 }
 0x4f9   :  { %646 = vst [vmem:[%s2225_s5 + $0x30] sm:$0x3f] %v638_v21  ;;  %647 = vst.msk [vmem:[%s2225_s5 + $0x38] sm:$0x3f] %vm278_vm10, %v639_v57  ;;  %v1089_v41 = vadd.f32 %v1080_v29, %v1057_v47 }
 0x4fb   :  { %v1112_v6 = vpop.permute.xlu1 %1111  ;;  %v1117_v22 = vpop.permute.xlu0 %1116 }
 0x4fc   :  { %v1123_v34 = vmul.f32 %v1286_v60, %v1112_v6  ;;  %v1124_v31 = vmul.f32 %v1287_v43, %v1112_v6  ;;  %v1125_v28 = vmul.f32 %v1288_v13, %v1117_v22  ;;  %v1126_v63 = vmul.f32 %v1289_v23, %v1117_v22 }
 0x4fe   :  { %v1131_v62 = vadd.f32 %v1123_v34, %v1086_v25  ;;  %v1132_v46 = vadd.f32 %v1124_v31, %v1087_v24  ;;  %v1133_v1 = vadd.f32 %v1125_v28, %v1088_v55  ;;  %v1134_v49 = vadd.f32 %v1126_v63, %v1089_v41 }
 0x500   :  { %1294 = vst [vmem:[%s2225_s5 + $0x60] sm:$0xff] %v1131_v62  ;;  %1295 = vst.msk [vmem:[%s2225_s5 + $0x68] sm:$0xff] %vm263_vm9, %v1132_v46 }
 0x501   :  { %1296 = vst [vmem:[%s2225_s5 + $0x70] sm:$0x3f] %v1133_v1  ;;  %1297 = vst.msk [vmem:[%s2225_s5 + $0x78] sm:$0x3f] %vm278_vm10, %v1134_v49 }
 0x502   :  { %1416 = dma.done.wait [#allocation3], 16  }
 0x503   :  { %1417 = vsyncadd [#allocation3], 4294967280 }
 0x504   :  { %1254 = vsyncpa [#allocation3], 1 }

</bundles_post_ra>
